<compile_context>
chip_gen: v6e
topology: v6e:2x2x1
jax: 0.10.0
libtpu: 0.0.40
codegen_flags: <defaults>
</compile_context>

<pallas_src>
import jax
import jax.numpy as jnp
import numpy as np
from jax.experimental import pallas as pl
from jax.experimental.pallas import tpu as pltpu

_HEAD_PAD = 128  # lane-pad the 1-wide head so the output store is lane-dense


def _leaky_relu(x, slope=0.2):
    return jnp.where(x > 0, x, slope * x)


def _stable_sigmoid(x):
    # exp() only ever sees non-positive arguments -> no overflow; the exp and
    # the reciprocal both route to the EUP slot, freeing VALU in the epilogue.
    e = jnp.exp(-jnp.abs(x))
    inv = pl.reciprocal(1.0 + e, approx=False)
    return jnp.where(x >= 0, inv, e * inv)


def discriminator_kernel(x_ref, w1_ref, b1_ref, w2_ref, b2_ref, w3_ref, b3_ref, o_ref):
    """Fused MLP on one batch tile: (TB, K) -> 512 -> 256 -> 128 (lane-padded 1)."""
    cdt = w1_ref.dtype  # compute dtype of the matmul operands (f32 or bf16)
    x = x_ref[...]

    # Layer 1: Linear(K, 512) + LeakyReLU(0.2)   (f32 accumulate, f32 bias add)
    h1 = jnp.dot(x, w1_ref[...], preferred_element_type=jnp.float32) + b1_ref[...]
    h1 = _leaky_relu(h1).astype(cdt)

    # Layer 2: Linear(512, 256) + LeakyReLU(0.2)
    h2 = jnp.dot(h1, w2_ref[...], preferred_element_type=jnp.float32) + b2_ref[...]
    h2 = _leaky_relu(h2).astype(cdt)

    # Layer 3: Linear(256, 128-padded-1) + stable Sigmoid (lane-dense store; col 0 real)
    h3 = jnp.dot(h2, w3_ref[...], preferred_element_type=jnp.float32) + b3_ref[...]
    o_ref[...] = _stable_sigmoid(h3)


def _pick_batch_tile(batch, d_in):
    """Large tiles amortize per-step overhead / MXU fill-drain, but keep >=4 grid
    steps (when the batch allows) so the 'parallel' axis can use both v7x TCs."""
    tb = 512 if d_in <= 1024 else 256
    while tb > 128 and pl.cdiv(batch, tb) < 4:
        tb //= 2
    # never use a tile meaningfully larger than the (8-rounded) batch itself
    tb = min(tb, max(8, ((batch + 7) // 8) * 8))
    return tb


def _vmem_limit_bytes(tb, d_in, compute_itemsize):
    x_tiles = 2 * tb * d_in * compute_itemsize                                # double-buffered x
    weights = (d_in * 512 + 512 * 256 + 256 * _HEAD_PAD) * compute_itemsize   # single-buffered
    biases = (512 + 256 + _HEAD_PAD) * 4
    out_tiles = 2 * tb * _HEAD_PAD * 4                                        # double-buffered out
    footprint = x_tiles + weights + biases + out_tiles
    # 2x headroom for compiler scratch, clamped to what every TPU generation has.
    return int(min(max(2 * footprint, 32 * 1024 * 1024), 64 * 1024 * 1024))


def discriminator_forward(img, params, *, tb=None, compute_dtype=jnp.float32):
    """img: (B, C, H, W). Returns validity (B, 1) float32."""
    w1, b1, w2, b2, w3, b3 = params
    batch = img.shape[0]
    d_in = int(np.prod(img.shape[1:]))
    assert w1.shape[0] == d_in, (w1.shape, d_in)

    # Same semantics as torch .view(B, -1); cast matmul operands to compute_dtype.
    x = img.reshape(batch, d_in).astype(compute_dtype)
    w1c = w1.astype(compute_dtype)
    w2c = w2.astype(compute_dtype)
    w3c = w3.astype(compute_dtype)
    b1f = b1.astype(jnp.float32)
    b2f = b2.astype(jnp.float32)
    b3f = b3.astype(jnp.float32)

    # Zero-pad only the tiny N=1 head to 128 lanes (unmasked, lane-dense store).
    w3p = jnp.pad(w3c, ((0, 0), (0, _HEAD_PAD - w3c.shape[1])))
    b3p = jnp.pad(b3f, ((0, 0), (0, _HEAD_PAD - b3f.shape[1])))

    if tb is None:
        tb = _pick_batch_tile(batch, d_in)
    grid = (pl.cdiv(batch, tb),)
    b_pad = grid[0] * tb  # output rows; rows >= batch are garbage and sliced off

    compute_itemsize = jnp.dtype(compute_dtype).itemsize

    def run(single_buffer_weights):
        def wspec(shape):
            # Grid-invariant operand: constant index_map -> stays VMEM-resident.
            kwargs = {}
            if single_buffer_weights:
                kwargs["pipeline_mode"] = pl.Buffered(1)
            return pl.BlockSpec(shape, lambda i, _n=len(shape): (0,) * _n, **kwargs)

        return pl.pallas_call(
            discriminator_kernel,
            out_shape=jax.ShapeDtypeStruct((b_pad, _HEAD_PAD), jnp.float32),
            grid_spec=pltpu.PrefetchScalarGridSpec(
                num_scalar_prefetch=0,
                grid=grid,
                in_specs=[
                    # x tiles stream along the batch grid axis (double-buffered DMA)
                    pl.BlockSpec((tb, d_in), lambda i: (i, 0)),
                    wspec((d_in, 512)),        # W1
                    wspec((1, 512)),           # b1 (f32)
                    wspec((512, 256)),         # W2
                    wspec((1, 256)),           # b2 (f32)
                    wspec((256, _HEAD_PAD)),   # W3 (lane-padded)
                    wspec((1, _HEAD_PAD)),     # b3 (lane-padded, f32)
                ],
                out_specs=pl.BlockSpec((tb, _HEAD_PAD), lambda i: (i, 0)),
            ),
            compiler_params=pltpu.CompilerParams(
                dimension_semantics=("parallel",),  # batch axis: megacore-shardable
                vmem_limit_bytes=_vmem_limit_bytes(tb, d_in, compute_itemsize),
            ),
        )(x, w1c, b1f, w2c, b2f, w3p, b3p)

    try:
        out = run(single_buffer_weights=True)
    except Exception:
        # Fallback for jax versions that reject pipeline_mode=pl.Buffered(1);
        # identical semantics, just double-buffers the (grid-invariant) weights.
        out = run(single_buffer_weights=False)

    # Drop batch padding and the 127 zero lanes of the padded head.
    return out[:batch, :1]


def init_params(key, d_in):
    """Deterministic init mirroring nn.Linear's U(-1/sqrt(fan_in), 1/sqrt(fan_in))."""
    ks = jax.random.split(key, 6)

    def linear(kw, kb, fan_in, fan_out):
        bound = 1.0 / np.sqrt(fan_in)
        # stored as (in, out) so the kernel computes x @ W + b
        w = jax.random.uniform(kw, (fan_in, fan_out), jnp.float32, -bound, bound)
        b = jax.random.uniform(kb, (1, fan_out), jnp.float32, -bound, bound)
        return w, b

    w1, b1 = linear(ks[0], ks[1], d_in, 512)
    w2, b2 = linear(ks[2], ks[3], 512, 256)
    w3, b3 = linear(ks[4], ks[5], 256, 1)
    return (w1, b1, w2, b2, w3, b3)


def reference_forward(img, params):
    """Pure-JAX reference for correctness checking."""
    w1, b1, w2, b2, w3, b3 = params
    x = img.reshape(img.shape[0], -1)
    h1 = x @ w1 + b1
    h1 = jnp.where(h1 > 0, h1, 0.2 * h1)
    h2 = h1 @ w2 + b2
    h2 = jnp.where(h2 > 0, h2, 0.2 * h2)
    return jax.nn.sigmoid(h2 @ w3 + b3)


if __name__ == "__main__":
    key = jax.random.PRNGKey(0)
    k_img, k_param = jax.random.split(key)

    # Small img_shape consistent with the module: (C, H, W) = (1, 16, 16) -> 256 features
    B, C, H, W = 8, 1, 16, 16
    img = jax.random.normal(k_img, (B, C, H, W), dtype=jnp.float32)
    params = init_params(k_param, C * H * W)

    ref = reference_forward(img, params)

    # f32 operand path: must match the pure-JAX reference tightly.
    validity = jax.block_until_ready(discriminator_forward(img, params))
    assert validity.shape == (B, 1)
    np.testing.assert_allclose(np.asarray(validity), np.asarray(ref), rtol=1e-5, atol=1e-5)

    # bf16 operand path (MXU-native on v6e/v7x, f32 accumulate): looser tolerance.
    validity_bf16 = jax.block_until_ready(
        discriminator_forward(img, params, compute_dtype=jnp.bfloat16))
    np.testing.assert_allclose(np.asarray(validity_bf16), np.asarray(ref), rtol=5e-2, atol=5e-2)

    print("KERNEL_OK")
</pallas_src>

<mosaic_0001>
module attributes {stable_mosaic.version = 11 : i64} {
  func.func @discriminator_kernel(%arg0: i32, %arg1: memref<8x256xf32, #tpu.memory_space<vmem>>, %arg2: memref<256x512xf32, #tpu.memory_space<vmem>>, %arg3: memref<1x512xf32, #tpu.memory_space<vmem>>, %arg4: memref<512x256xf32, #tpu.memory_space<vmem>>, %arg5: memref<1x256xf32, #tpu.memory_space<vmem>>, %arg6: memref<256x128xf32, #tpu.memory_space<vmem>>, %arg7: memref<1x128xf32, #tpu.memory_space<vmem>>, %arg8: memref<8x128xf32, #tpu.memory_space<vmem>>) attributes {dimension_semantics = [#tpu.dimension_semantics<parallel>], iteration_bounds = array<i64: 1>, scalar_prefetch = 0 : i64, scratch_operands = 0 : i64, tpu.core_type = #tpu.core_type<tc>, window_params = [{transform_indices = @transform_0, window_bounds = array<i64: 8, 256>}, {pipeline_mode = #tpu.pipeline_mode<synchronous>, transform_indices = @transform_1, window_bounds = array<i64: 256, 512>}, {pipeline_mode = #tpu.pipeline_mode<synchronous>, transform_indices = @transform_2, window_bounds = array<i64: 1, 512>}, {pipeline_mode = #tpu.pipeline_mode<synchronous>, transform_indices = @transform_3, window_bounds = array<i64: 512, 256>}, {pipeline_mode = #tpu.pipeline_mode<synchronous>, transform_indices = @transform_4, window_bounds = array<i64: 1, 256>}, {pipeline_mode = #tpu.pipeline_mode<synchronous>, transform_indices = @transform_5, window_bounds = array<i64: 256, 128>}, {pipeline_mode = #tpu.pipeline_mode<synchronous>, transform_indices = @transform_6, window_bounds = array<i64: 1, 128>}, {transform_indices = @transform_7, window_bounds = array<i64: 8, 128>}]} {
    %c0 = arith.constant 0 : index
    %c0_0 = arith.constant 0 : index
    %0 = vector.load %arg1[%c0, %c0_0] : memref<8x256xf32, #tpu.memory_space<vmem>>, vector<8x256xf32>
    %c0_1 = arith.constant 0 : index
    %c0_2 = arith.constant 0 : index
    %1 = vector.load %arg2[%c0_1, %c0_2] : memref<256x512xf32, #tpu.memory_space<vmem>>, vector<256x512xf32>
    %cst = arith.constant dense<0.000000e+00> : vector<8x512xf32>
    %2 = tpu.matmul %0, %1, %cst {dimension_numbers = #tpu.dot_dimension_numbers<[1], [0], [0], [1], [0, 0, 1, 1], [], []>} : vector<8x256xf32>, vector<256x512xf32>, vector<8x512xf32> -> vector<8x512xf32>
    %c0_3 = arith.constant 0 : index
    %c0_4 = arith.constant 0 : index
    %3 = vector.load %arg3[%c0_3, %c0_4] : memref<1x512xf32, #tpu.memory_space<vmem>>, vector<1x512xf32>
    %4 = vector.broadcast %3 : vector<1x512xf32> to vector<8x512xf32>
    %5 = arith.addf %2, %4 : vector<8x512xf32>
    %cst_5 = arith.constant 0.000000e+00 : f32
    %6 = vector.broadcast %cst_5 : f32 to vector<8x512xf32>
    %7 = arith.cmpf ogt, %5, %6 : vector<8x512xf32>
    %cst_6 = arith.constant 2.000000e-01 : f32
    %8 = vector.broadcast %cst_6 : f32 to vector<8x512xf32>
    %9 = arith.mulf %8, %5 : vector<8x512xf32>
    %10 = arith.select %7, %5, %9 : vector<8x512xi1>, vector<8x512xf32>
    %c0_7 = arith.constant 0 : index
    %c0_8 = arith.constant 0 : index
    %11 = vector.load %arg4[%c0_7, %c0_8] : memref<512x256xf32, #tpu.memory_space<vmem>>, vector<512x256xf32>
    %cst_9 = arith.constant dense<0.000000e+00> : vector<8x256xf32>
    %12 = tpu.matmul %10, %11, %cst_9 {dimension_numbers = #tpu.dot_dimension_numbers<[1], [0], [0], [1], [0, 0, 1, 1], [], []>} : vector<8x512xf32>, vector<512x256xf32>, vector<8x256xf32> -> vector<8x256xf32>
    %c0_10 = arith.constant 0 : index
    %c0_11 = arith.constant 0 : index
    %13 = vector.load %arg5[%c0_10, %c0_11] : memref<1x256xf32, #tpu.memory_space<vmem>>, vector<1x256xf32>
    %14 = vector.broadcast %13 : vector<1x256xf32> to vector<8x256xf32>
    %15 = arith.addf %12, %14 : vector<8x256xf32>
    %cst_12 = arith.constant 0.000000e+00 : f32
    %16 = vector.broadcast %cst_12 : f32 to vector<8x256xf32>
    %17 = arith.cmpf ogt, %15, %16 : vector<8x256xf32>
    %cst_13 = arith.constant 2.000000e-01 : f32
    %18 = vector.broadcast %cst_13 : f32 to vector<8x256xf32>
    %19 = arith.mulf %18, %15 : vector<8x256xf32>
    %20 = arith.select %17, %15, %19 : vector<8x256xi1>, vector<8x256xf32>
    %c0_14 = arith.constant 0 : index
    %c0_15 = arith.constant 0 : index
    %21 = vector.load %arg6[%c0_14, %c0_15] : memref<256x128xf32, #tpu.memory_space<vmem>>, vector<256x128xf32>
    %cst_16 = arith.constant dense<0.000000e+00> : vector<8x128xf32>
    %22 = tpu.matmul %20, %21, %cst_16 {dimension_numbers = #tpu.dot_dimension_numbers<[1], [0], [0], [1], [0, 0, 1, 1], [], []>} : vector<8x256xf32>, vector<256x128xf32>, vector<8x128xf32> -> vector<8x128xf32>
    %c0_17 = arith.constant 0 : index
    %c0_18 = arith.constant 0 : index
    %23 = vector.load %arg7[%c0_17, %c0_18] : memref<1x128xf32, #tpu.memory_space<vmem>>, vector<1x128xf32>
    %24 = vector.broadcast %23 : vector<1x128xf32> to vector<8x128xf32>
    %25 = arith.addf %22, %24 : vector<8x128xf32>
    %26 = math.absf %25 : vector<8x128xf32>
    %cst_19 = arith.constant 0.000000e+00 : f32
    %27 = vector.broadcast %cst_19 : f32 to vector<8x128xf32>
    %28 = arith.subf %27, %26 : vector<8x128xf32>
    %29 = math.exp %28 : vector<8x128xf32>
    %cst_20 = arith.constant 1.000000e+00 : f32
    %30 = vector.broadcast %cst_20 : f32 to vector<8x128xf32>
    %31 = arith.addf %30, %29 : vector<8x128xf32>
    %32 = tpu.reciprocal %31 : vector<8x128xf32> -> vector<8x128xf32>
    %cst_21 = arith.constant 0.000000e+00 : f32
    %33 = vector.broadcast %cst_21 : f32 to vector<8x128xf32>
    %34 = arith.cmpf oge, %25, %33 : vector<8x128xf32>
    %35 = arith.mulf %29, %32 : vector<8x128xf32>
    %36 = arith.select %34, %32, %35 : vector<8x128xi1>, vector<8x128xf32>
    %c0_22 = arith.constant 0 : index
    %c0_23 = arith.constant 0 : index
    %37 = vector.load %arg8[%c0_22, %c0_23] : memref<8x128xf32, #tpu.memory_space<vmem>>, vector<8x128xf32>
    tpu.vector_store %arg8[%c0_22, %c0_23], %36 {strides = array<i32>} : memref<8x128xf32, #tpu.memory_space<vmem>>, vector<8x128xf32>,
    return
  }
  func.func @transform_0(%arg0: i32) -> (i32, i32) {
    %c0_i32 = arith.constant 0 : i32
    %c0_i32_0 = arith.constant 0 : i32
    return %arg0, %c0_i32 : i32, i32
  }
  func.func @transform_1(%arg0: i32) -> (i32, i32) {
    %c0_i32 = arith.constant 0 : i32
    %c0_i32_0 = arith.constant 0 : i32
    %c0_i32_1 = arith.constant 0 : i32
    return %c0_i32, %c0_i32_0 : i32, i32
  }
  func.func @transform_2(%arg0: i32) -> (i32, i32) {
    %c0_i32 = arith.constant 0 : i32
    %c0_i32_0 = arith.constant 0 : i32
    %c0_i32_1 = arith.constant 0 : i32
    return %c0_i32, %c0_i32_0 : i32, i32
  }
  func.func @transform_3(%arg0: i32) -> (i32, i32) {
    %c0_i32 = arith.constant 0 : i32
    %c0_i32_0 = arith.constant 0 : i32
    %c0_i32_1 = arith.constant 0 : i32
    return %c0_i32, %c0_i32_0 : i32, i32
  }
  func.func @transform_4(%arg0: i32) -> (i32, i32) {
    %c0_i32 = arith.constant 0 : i32
    %c0_i32_0 = arith.constant 0 : i32
    %c0_i32_1 = arith.constant 0 : i32
    return %c0_i32, %c0_i32_0 : i32, i32
  }
  func.func @transform_5(%arg0: i32) -> (i32, i32) {
    %c0_i32 = arith.constant 0 : i32
    %c0_i32_0 = arith.constant 0 : i32
    %c0_i32_1 = arith.constant 0 : i32
    return %c0_i32, %c0_i32_0 : i32, i32
  }
  func.func @transform_6(%arg0: i32) -> (i32, i32) {
    %c0_i32 = arith.constant 0 : i32
    %c0_i32_0 = arith.constant 0 : i32
    %c0_i32_1 = arith.constant 0 : i32
    return %c0_i32, %c0_i32_0 : i32, i32
  }
  func.func @transform_7(%arg0: i32) -> (i32, i32) {
    %c0_i32 = arith.constant 0 : i32
    %c0_i32_0 = arith.constant 0 : i32
    return %arg0, %c0_i32 : i32, i32
  }
}

module attributes {stable_mosaic.version = 11 : i64} {
  func.func @discriminator_kernel(%arg0: i32, %arg1: memref<8x256xf32, #tpu.memory_space<vmem>>, %arg2: memref<256x512xf32, #tpu.memory_space<vmem>>, %arg3: memref<1x512xf32, #tpu.memory_space<vmem>>, %arg4: memref<512x256xf32, #tpu.memory_space<vmem>>, %arg5: memref<1x256xf32, #tpu.memory_space<vmem>>, %arg6: memref<256x128xf32, #tpu.memory_space<vmem>>, %arg7: memref<1x128xf32, #tpu.memory_space<vmem>>, %arg8: memref<8x128xf32, #tpu.memory_space<vmem>>) attributes {dimension_semantics = [#tpu.dimension_semantics<parallel>], iteration_bounds = array<i64: 1>, scalar_prefetch = 0 : i64, scratch_operands = 0 : i64, tpu.core_type = #tpu.core_type<tc>, window_params = [{transform_indices = @transform_0, window_bounds = array<i64: 8, 256>}, {pipeline_mode = #tpu.pipeline_mode<synchronous>, transform_indices = @transform_1, window_bounds = array<i64: 256, 512>}, {pipeline_mode = #tpu.pipeline_mode<synchronous>, transform_indices = @transform_2, window_bounds = array<i64: 1, 512>}, {pipeline_mode = #tpu.pipeline_mode<synchronous>, transform_indices = @transform_3, window_bounds = array<i64: 512, 256>}, {pipeline_mode = #tpu.pipeline_mode<synchronous>, transform_indices = @transform_4, window_bounds = array<i64: 1, 256>}, {pipeline_mode = #tpu.pipeline_mode<synchronous>, transform_indices = @transform_5, window_bounds = array<i64: 256, 128>}, {pipeline_mode = #tpu.pipeline_mode<synchronous>, transform_indices = @transform_6, window_bounds = array<i64: 1, 128>}, {transform_indices = @transform_7, window_bounds = array<i64: 8, 128>}]} {
    %c0 = arith.constant 0 : index
    %c0_0 = arith.constant 0 : index
    %0 = vector.load %arg1[%c0, %c0_0] : memref<8x256xf32, #tpu.memory_space<vmem>>, vector<8x256xf32>
    %c0_1 = arith.constant 0 : index
    %c0_2 = arith.constant 0 : index
    %1 = vector.load %arg2[%c0_1, %c0_2] : memref<256x512xf32, #tpu.memory_space<vmem>>, vector<256x512xf32>
    %cst = arith.constant dense<0.000000e+00> : vector<8x512xf32>
    %2 = tpu.matmul %0, %1, %cst {dimension_numbers = #tpu.dot_dimension_numbers<[1], [0], [0], [1], [0, 0, 1, 1], [], []>} : vector<8x256xf32>, vector<256x512xf32>, vector<8x512xf32> -> vector<8x512xf32>
    %c0_3 = arith.constant 0 : index
    %c0_4 = arith.constant 0 : index
    %3 = vector.load %arg3[%c0_3, %c0_4] : memref<1x512xf32, #tpu.memory_space<vmem>>, vector<1x512xf32>
    %4 = vector.broadcast %3 : vector<1x512xf32> to vector<8x512xf32>
    %5 = arith.addf %2, %4 : vector<8x512xf32>
    %cst_5 = arith.constant 0.000000e+00 : f32
    %6 = vector.broadcast %cst_5 : f32 to vector<8x512xf32>
    %7 = arith.cmpf ogt, %5, %6 : vector<8x512xf32>
    %cst_6 = arith.constant 2.000000e-01 : f32
    %8 = vector.broadcast %cst_6 : f32 to vector<8x512xf32>
    %9 = arith.mulf %8, %5 : vector<8x512xf32>
    %10 = arith.select %7, %5, %9 : vector<8x512xi1>, vector<8x512xf32>
    %c0_7 = arith.constant 0 : index
    %c0_8 = arith.constant 0 : index
    %11 = vector.load %arg4[%c0_7, %c0_8] : memref<512x256xf32, #tpu.memory_space<vmem>>, vector<512x256xf32>
    %cst_9 = arith.constant dense<0.000000e+00> : vector<8x256xf32>
    %12 = tpu.matmul %10, %11, %cst_9 {dimension_numbers = #tpu.dot_dimension_numbers<[1], [0], [0], [1], [0, 0, 1, 1], [], []>} : vector<8x512xf32>, vector<512x256xf32>, vector<8x256xf32> -> vector<8x256xf32>
    %c0_10 = arith.constant 0 : index
    %c0_11 = arith.constant 0 : index
    %13 = vector.load %arg5[%c0_10, %c0_11] : memref<1x256xf32, #tpu.memory_space<vmem>>, vector<1x256xf32>
    %14 = vector.broadcast %13 : vector<1x256xf32> to vector<8x256xf32>
    %15 = arith.addf %12, %14 : vector<8x256xf32>
    %cst_12 = arith.constant 0.000000e+00 : f32
    %16 = vector.broadcast %cst_12 : f32 to vector<8x256xf32>
    %17 = arith.cmpf ogt, %15, %16 : vector<8x256xf32>
    %cst_13 = arith.constant 2.000000e-01 : f32
    %18 = vector.broadcast %cst_13 : f32 to vector<8x256xf32>
    %19 = arith.mulf %18, %15 : vector<8x256xf32>
    %20 = arith.select %17, %15, %19 : vector<8x256xi1>, vector<8x256xf32>
    %c0_14 = arith.constant 0 : index
    %c0_15 = arith.constant 0 : index
    %21 = vector.load %arg6[%c0_14, %c0_15] : memref<256x128xf32, #tpu.memory_space<vmem>>, vector<256x128xf32>
    %cst_16 = arith.constant dense<0.000000e+00> : vector<8x128xf32>
    %22 = tpu.matmul %20, %21, %cst_16 {dimension_numbers = #tpu.dot_dimension_numbers<[1], [0], [0], [1], [0, 0, 1, 1], [], []>} : vector<8x256xf32>, vector<256x128xf32>, vector<8x128xf32> -> vector<8x128xf32>
    %c0_17 = arith.constant 0 : index
    %c0_18 = arith.constant 0 : index
    %23 = vector.load %arg7[%c0_17, %c0_18] : memref<1x128xf32, #tpu.memory_space<vmem>>, vector<1x128xf32>
    %24 = vector.broadcast %23 : vector<1x128xf32> to vector<8x128xf32>
    %25 = arith.addf %22, %24 : vector<8x128xf32>
    %26 = math.absf %25 : vector<8x128xf32>
    %cst_19 = arith.constant 0.000000e+00 : f32
    %27 = vector.broadcast %cst_19 : f32 to vector<8x128xf32>
    %28 = arith.subf %27, %26 : vector<8x128xf32>
    %29 = math.exp %28 : vector<8x128xf32>
    %cst_20 = arith.constant 1.000000e+00 : f32
    %30 = vector.broadcast %cst_20 : f32 to vector<8x128xf32>
    %31 = arith.addf %30, %29 : vector<8x128xf32>
    %32 = tpu.reciprocal %31 : vector<8x128xf32> -> vector<8x128xf32>
    %cst_21 = arith.constant 0.000000e+00 : f32
    %33 = vector.broadcast %cst_21 : f32 to vector<8x128xf32>
    %34 = arith.cmpf oge, %25, %33 : vector<8x128xf32>
    %35 = arith.mulf %29, %32 : vector<8x128xf32>
    %36 = arith.select %34, %32, %35 : vector<8x128xi1>, vector<8x128xf32>
    %c0_22 = arith.constant 0 : index
    %c0_23 = arith.constant 0 : index
    %37 = vector.load %arg8[%c0_22, %c0_23] : memref<8x128xf32, #tpu.memory_space<vmem>>, vector<8x128xf32>
    tpu.vector_store %arg8[%c0_22, %c0_23], %36 {strides = array<i32>} : memref<8x128xf32, #tpu.memory_space<vmem>>, vector<8x128xf32>,
    return
  }
  func.func @transform_0(%arg0: i32) -> (i32, i32) {
    %c0_i32 = arith.constant 0 : i32
    %c0_i32_0 = arith.constant 0 : i32
    return %arg0, %c0_i32 : i32, i32
  }
  func.func @transform_1(%arg0: i32) -> (i32, i32) {
    %c0_i32 = arith.constant 0 : i32
    %c0_i32_0 = arith.constant 0 : i32
    %c0_i32_1 = arith.constant 0 : i32
    return %c0_i32, %c0_i32_0 : i32, i32
  }
  func.func @transform_2(%arg0: i32) -> (i32, i32) {
    %c0_i32 = arith.constant 0 : i32
    %c0_i32_0 = arith.constant 0 : i32
    %c0_i32_1 = arith.constant 0 : i32
    return %c0_i32, %c0_i32_0 : i32, i32
  }
  func.func @transform_3(%arg0: i32) -> (i32, i32) {
    %c0_i32 = arith.constant 0 : i32
    %c0_i32_0 = arith.constant 0 : i32
    %c0_i32_1 = arith.constant 0 : i32
    return %c0_i32, %c0_i32_0 : i32, i32
  }
  func.func @transform_4(%arg0: i32) -> (i32, i32) {
    %c0_i32 = arith.constant 0 : i32
    %c0_i32_0 = arith.constant 0 : i32
    %c0_i32_1 = arith.constant 0 : i32
    return %c0_i32, %c0_i32_0 : i32, i32
  }
  func.func @transform_5(%arg0: i32) -> (i32, i32) {
    %c0_i32 = arith.constant 0 : i32
    %c0_i32_0 = arith.constant 0 : i32
    %c0_i32_1 = arith.constant 0 : i32
    return %c0_i32, %c0_i32_0 : i32, i32
  }
  func.func @transform_6(%arg0: i32) -> (i32, i32) {
    %c0_i32 = arith.constant 0 : i32
    %c0_i32_0 = arith.constant 0 : i32
    %c0_i32_1 = arith.constant 0 : i32
    return %c0_i32, %c0_i32_0 : i32, i32
  }
  func.func @transform_7(%arg0: i32) -> (i32, i32) {
    %c0_i32 = arith.constant 0 : i32
    %c0_i32_0 = arith.constant 0 : i32
    return %arg0, %c0_i32 : i32, i32
  }
}

</mosaic_0001>

<bundles_post_ra>
// kernel: tpu_custom_call.1
= control target key start
LH: loop header
LB: loop body
LE: loop exit
PB: predicated region body
PF: predicated region fallthrough
CT: control target
= control target key end

     0   :  { %12 = vsyncpa [#allocation3], 0  ;;  %s1091_s0 = inlined_call_operand.hbm [shape: f32[8,256], index: 0, kind: input, shape index: {}]   ;;  %s1092_s1 = inlined_call_operand.hbm [shape: f32[256,512], index: 1, kind: input, shape index: {}]   ;;  %s1093_s2 = inlined_call_operand.hbm [shape: f32[1,512], index: 2, kind: input, shape index: {}]   ;;  %s1094_s3 = inlined_call_operand.hbm [shape: f32[512,256], index: 3, kind: input, shape index: {}]   ;;  %s1095_s4 = inlined_call_operand.vmem [shape: f32[1,256], index: 4, kind: input, shape index: {}]   ;;  %s1096_s5 = inlined_call_operand.hbm [shape: f32[256,128], index: 5, kind: input, shape index: {}]   ;;  %s1097_s6 = inlined_call_operand.vmem [shape: f32[1,128], index: 6, kind: input, shape index: {}]   ;;  %s1098_s7 = inlined_call_operand.hbm [shape: f32[8,128], index: 7, kind: output, shape index: {}]  }
   0x1   :  { %13 = vsyncpa [#allocation6], 0 }
   0x2   :  { %14 = vsyncpa [#allocation9], 0 }
   0x3   :  { %15 = vsyncpa [#allocation4], 0  ;;  %s1001_s24 = smov [#allocation5]  }
   0x4   :  { %s31_s25 = sshll.u32 %s1001_s24, 4  ;;  %s32_s25 = int_to_ptr.vmem [resolvable:$true] %s31_s25 }
   0x5   :  { %s881_s26 = scalar_lea.vmem %s32_s25, 16384  ;;  %p886_p1 = scmp.lt.s32.totalorder %s32_s25, %s32_s25 }
   0x6   :  { %p882_p0 = scmp.ne.s32.totalorder %s32_s25, %s881_s26  ;;  %p887_p2 = scmp.lt.s32.totalorder %s881_s26, %s881_s26 }
   0x8   :  { %p888_p3 = por %p887_p2, %p886_p1 }
   0xa   :  { %p889_p4 = pnand %p888_p3, %p882_p0 }
   0xc   :  { %892 = shalt.err (!%p889_p4)
}
   0xd   :  { %s1002_s27 = smov 512   ;;  %s1003_s28 = smov 32  }
   0xe   :  { %37 = dma.hbm_to_vmem [thread:$0]  %s1092_s1, 16384, %s32_s25, [#allocation6], %s1002_s27, %s1002_s27, %s1003_s28  }
   0xf   :  { %s1004_s8 = smov [#allocation8]  }
  0x10   :  { %s53_s9 = sshll.u32 %s1004_s8, 4  ;;  %s54_s9 = int_to_ptr.vmem [resolvable:$true] %s53_s9 }
  0x11   :  { %s901_s10 = scalar_lea.vmem %s54_s9, 16384  ;;  %p906_p6 = scmp.lt.s32.totalorder %s54_s9, %s54_s9 }
  0x12   :  { %p902_p5 = scmp.ne.s32.totalorder %s54_s9, %s901_s10  ;;  %p907_p7 = scmp.lt.s32.totalorder %s901_s10, %s901_s10 }
  0x14   :  { %p908_p8 = por %p907_p7, %p906_p6 }
  0x16   :  { %p909_p9 = pnand %p908_p8, %p902_p5 }
  0x18   :  { %912 = shalt.err (!%p909_p9)
}
  0x19   :  { %s1005_s11 = smov 256   ;;  %s1006_s12 = smov 16  }
  0x1a   :  { %59 = dma.hbm_to_vmem [thread:$0]  %s1094_s3, 16384, %s54_s9, [#allocation9], %s1005_s11, %s1005_s11, %s1006_s12  }
  0x1b   :  { %s1007_s15 = smov [#allocation2]   ;;  %s1008_s17 = smov [#allocation7]  }
  0x1c   :  { %s22_s16 = sshll.u32 %s1007_s15, 4  ;;  %s44_s1 = sshll.u32 %s1008_s17, 4  ;;  %s23_s16 = int_to_ptr.vmem [resolvable:$true] %s22_s16  ;;  %s45_s1 = int_to_ptr.vmem [resolvable:$true] %s44_s1 }
  0x1d   :  { %s921_s18 = scalar_lea.vmem %s23_s16, 256  ;;  %p926_p11 = scmp.lt.s32.totalorder %s23_s16, %s23_s16 }
  0x1e   :  { %p922_p10 = scmp.ne.s32.totalorder %s23_s16, %s921_s18  ;;  %p927_p12 = scmp.lt.s32.totalorder %s921_s18, %s921_s18 }
  0x20   :  { %p928_p13 = por %p927_p12, %p926_p11 }
  0x22   :  { %p929_p0 = pnand %p928_p13, %p922_p10 }
  0x24   :  { %932 = shalt.err (!%p929_p0)
}
  0x25   :  { %25 = dma.hbm_to_vmem [thread:$0]  %s1091_s0, 256, %s23_s16, [#allocation3]  }
  0x26   :  { %s941_s21 = scalar_lea.vmem %s45_s1, 64  ;;  %p946_p2 = scmp.lt.s32.totalorder %s45_s1, %s45_s1 }
  0x27   :  { %p942_p1 = scmp.ne.s32.totalorder %s45_s1, %s941_s21  ;;  %p947_p3 = scmp.lt.s32.totalorder %s941_s21, %s941_s21 }
  0x29   :  { %p948_p4 = por %p947_p3, %p946_p2 }
  0x2b   :  { %p949_p5 = pnand %p948_p4, %p942_p1 }
  0x2d   :  { %952 = shalt.err (!%p949_p5)
}
  0x2e   :  { %47 = dma.hbm_to_vmem [thread:$0]  %s1093_s2, 64, %s45_s1, [#allocation6]  }
  0x2f   :  { %s1009_s23 = smov [#allocation10]  }
  0x30   :  { %s67_s24 = sshll.u32 %s1009_s23, 4  ;;  %s68_s24 = int_to_ptr.vmem [resolvable:$true] %s67_s24 }
  0x31   :  { %s961_s25 = scalar_lea.vmem %s68_s24, 4096  ;;  %p966_p7 = scmp.lt.s32.totalorder %s68_s24, %s68_s24 }
  0x32   :  { %p962_p6 = scmp.ne.s32.totalorder %s68_s24, %s961_s25  ;;  %p967_p8 = scmp.lt.s32.totalorder %s961_s25, %s961_s25 }
  0x34   :  { %p968_p9 = por %p967_p8, %p966_p7 }
  0x36   :  { %p969_p10 = pnand %p968_p9, %p962_p6 }
  0x38   :  { %972 = shalt.err (!%p969_p10)
}
  0x39   :  { %s1010_s0 = smov 128   ;;  %s1011_s26 = smov 8  }
  0x3a   :  { %73 = dma.hbm_to_vmem [thread:$0]  %s1096_s5, 4096, %s68_s24, [#allocation9], %s1010_s0, %s1010_s0, %s1011_s26  }
  0x3b   :  { %993 = dma.done.wait [#allocation3], 256  }
  0x3c   :  { %994 = vsyncadd [#allocation3], 4294967040 }
  0x3d   :  { %995 = dma.done.wait [#allocation6], 16448  }
  0x3e   :  { %996 = vsyncadd [#allocation6], 4294950848 }
  0x3f   :  { %997 = dma.done.wait [#allocation9], 20480  }
  0x40   :  { %998 = vsyncadd [#allocation9], 4294946816  ;;  %v154_v0 = vld [vmem:[#allocation5 + $0x1e8] sm:$0xff]  ;;  %v156_v1 = vld [vmem:[#allocation5 + $0x1f8] sm:$0xff]  ;;  %s1012_s30 = smov [#allocation11]  }
  0x41   :  { %v153_v2 = vld [vmem:[#allocation5 + $0x1e0] sm:$0xff]  ;;  %243 = vmatprep.subr.mxu0 %v154_v0  ;;  %314 = vmatprep.subr.mxu1 %v156_v1  ;;  %v155_v3 = vld [vmem:[#allocation5 + $0x1f0] sm:$0xff]  ;;  %v150_v4 = vld [vmem:[#allocation5 + $0x1c8] sm:$0xff]  ;;  %s810_s8 = sshll.u32 %s1012_s30, 4  ;;  %s811_s8 = int_to_ptr.vmem [resolvable:$true] %s810_s8 }
  0x42   :  { %v152_v5 = vld [vmem:[#allocation5 + $0x1d8] sm:$0xff]  ;;  %244 = vmatpush1.msra.mxu0 %v153_v2  ;;  %315 = vmatpush1.msra.mxu1 %v155_v3  ;;  %v149_v6 = vld [vmem:[#allocation5 + $0x1c0] sm:$0xff]  ;;  %v151_v7 = vld [vmem:[#allocation5 + $0x1d0] sm:$0xff]  ;;  %s973_s9 = scalar_lea.vmem %s811_s8, 128  ;;  %p978_p12 = scmp.lt.s32.totalorder %s811_s8, %s811_s8 }
  0x43   :  { %v146_v8 = vld [vmem:[#allocation5 + $0x1a8] sm:$0xff]  ;;  %245 = vmatprep.subr.mxu0 %v150_v4  ;;  %316 = vmatprep.subr.mxu1 %v152_v5  ;;  %v148_v9 = vld [vmem:[#allocation5 + $0x1b8] sm:$0xff]  ;;  %v145_v10 = vld [vmem:[#allocation5 + $0x1a0] sm:$0xff]  ;;  %p974_p11 = scmp.ne.s32.totalorder %s811_s8, %s973_s9  ;;  %p979_p13 = scmp.lt.s32.totalorder %s973_s9, %s973_s9 }
  0x44   :  { %v147_v11 = vld [vmem:[#allocation5 + $0x1b0] sm:$0xff]  ;;  %246 = vmatpush1.msra.mxu0 %v149_v6  ;;  %317 = vmatpush1.msra.mxu1 %v151_v7  ;;  %v142_v12 = vld [vmem:[#allocation5 + $0x188] sm:$0xff]  ;;  %v144_v13 = vld [vmem:[#allocation5 + $0x198] sm:$0xff] }
  0x45   :  { %247 = vmatprep.subr.mxu0 %v146_v8  ;;  %318 = vmatprep.subr.mxu1 %v148_v9  ;;  %v141_v14 = vld [vmem:[#allocation5 + $0x180] sm:$0xff]  ;;  %v143_v15 = vld [vmem:[#allocation5 + $0x190] sm:$0xff]  ;;  %v138_v16 = vld [vmem:[#allocation5 + $0x168] sm:$0xff]  ;;  %p980_p0 = por %p979_p13, %p978_p12 }
  0x46   :  { %248 = vmatpush1.msra.mxu0 %v145_v10  ;;  %319 = vmatpush1.msra.mxu1 %v147_v11  ;;  %v140_v17 = vld [vmem:[#allocation5 + $0x178] sm:$0xff]  ;;  %v137_v18 = vld [vmem:[#allocation5 + $0x160] sm:$0xff]  ;;  %v139_v19 = vld [vmem:[#allocation5 + $0x170] sm:$0xff] }
  0x47   :  { %249 = vmatprep.subr.mxu0 %v142_v12  ;;  %320 = vmatprep.subr.mxu1 %v144_v13  ;;  %v134_v20 = vld [vmem:[#allocation5 + $0x148] sm:$0xff]  ;;  %v136_v21 = vld [vmem:[#allocation5 + $0x158] sm:$0xff]  ;;  %v133_v22 = vld [vmem:[#allocation5 + $0x140] sm:$0xff]  ;;  %p981_p1 = pnand %p980_p0, %p974_p11 }
  0x48   :  { %250 = vmatpush1.msra.mxu0 %v141_v14  ;;  %321 = vmatpush1.msra.mxu1 %v143_v15  ;;  %v135_v23 = vld [vmem:[#allocation5 + $0x150] sm:$0xff]  ;;  %v130_v24 = vld [vmem:[#allocation5 + $0x128] sm:$0xff]  ;;  %v132_v25 = vld [vmem:[#allocation5 + $0x138] sm:$0xff] }
  0x49   :  { %251 = vmatprep.subr.mxu0 %v138_v16  ;;  %322 = vmatprep.subr.mxu1 %v140_v17  ;;  %v129_v26 = vld [vmem:[#allocation5 + $0x120] sm:$0xff]  ;;  %v131_v27 = vld [vmem:[#allocation5 + $0x130] sm:$0xff]  ;;  %v126_v28 = vld [vmem:[#allocation5 + $0x108] sm:$0xff] }
  0x4a   :  { %252 = vmatpush1.msra.mxu0 %v137_v18  ;;  %323 = vmatpush1.msra.mxu1 %v139_v19  ;;  %v128_v29 = vld [vmem:[#allocation5 + $0x118] sm:$0xff]  ;;  %v125_v30 = vld [vmem:[#allocation5 + $0x100] sm:$0xff]  ;;  %v127_v31 = vld [vmem:[#allocation5 + $0x110] sm:$0xff] }
  0x4b   :  { %253 = vmatprep.subr.mxu0 %v134_v20  ;;  %324 = vmatprep.subr.mxu1 %v136_v21  ;;  %v122_v32 = vld [vmem:[#allocation5 + $0xe8] sm:$0xff]  ;;  %v124_v33 = vld [vmem:[#allocation5 + $0xf8] sm:$0xff]  ;;  %v121_v34 = vld [vmem:[#allocation5 + $0xe0] sm:$0xff] }
  0x4c   :  { %254 = vmatpush1.msra.mxu0 %v133_v22  ;;  %325 = vmatpush1.msra.mxu1 %v135_v23  ;;  %v123_v35 = vld [vmem:[#allocation5 + $0xf0] sm:$0xff]  ;;  %v118_v36 = vld [vmem:[#allocation5 + $0xc8] sm:$0xff]  ;;  %v120_v37 = vld [vmem:[#allocation5 + $0xd8] sm:$0xff] }
  0x4d   :  { %255 = vmatprep.subr.mxu0 %v130_v24  ;;  %326 = vmatprep.subr.mxu1 %v132_v25  ;;  %v117_v38 = vld [vmem:[#allocation5 + $0xc0] sm:$0xff]  ;;  %v119_v39 = vld [vmem:[#allocation5 + $0xd0] sm:$0xff]  ;;  %v114_v40 = vld [vmem:[#allocation5 + $0xa8] sm:$0xff] }
  0x4e   :  { %256 = vmatpush1.msra.mxu0 %v129_v26  ;;  %327 = vmatpush1.msra.mxu1 %v131_v27  ;;  %v116_v41 = vld [vmem:[#allocation5 + $0xb8] sm:$0xff]  ;;  %v113_v42 = vld [vmem:[#allocation5 + $0xa0] sm:$0xff]  ;;  %v115_v43 = vld [vmem:[#allocation5 + $0xb0] sm:$0xff] }
  0x4f   :  { %257 = vmatprep.subr.mxu0 %v126_v28  ;;  %328 = vmatprep.subr.mxu1 %v128_v29  ;;  %v110_v44 = vld [vmem:[#allocation5 + $0x88] sm:$0xff]  ;;  %v112_v45 = vld [vmem:[#allocation5 + $0x98] sm:$0xff]  ;;  %v109_v46 = vld [vmem:[#allocation5 + $0x80] sm:$0xff] }
  0x50   :  { %258 = vmatpush1.msra.mxu0 %v125_v30  ;;  %329 = vmatpush1.msra.mxu1 %v127_v31  ;;  %v111_v47 = vld [vmem:[#allocation5 + $0x90] sm:$0xff]  ;;  %v106_v48 = vld [vmem:[#allocation5 + $0x68] sm:$0xff]  ;;  %v108_v49 = vld [vmem:[#allocation5 + $0x78] sm:$0xff] }
  0x51   :  { %259 = vmatprep.subr.mxu0 %v122_v32  ;;  %330 = vmatprep.subr.mxu1 %v124_v33  ;;  %v105_v50 = vld [vmem:[#allocation5 + $0x60] sm:$0xff]  ;;  %v107_v51 = vld [vmem:[#allocation5 + $0x70] sm:$0xff]  ;;  %v102_v52 = vld [vmem:[#allocation5 + $0x48] sm:$0xff] }
  0x52   :  { %260 = vmatpush1.msra.mxu0 %v121_v34  ;;  %331 = vmatpush1.msra.mxu1 %v123_v35  ;;  %v104_v53 = vld [vmem:[#allocation5 + $0x58] sm:$0xff]  ;;  %v101_v54 = vld [vmem:[#allocation5 + $0x40] sm:$0xff]  ;;  %v103_v55 = vld [vmem:[#allocation5 + $0x50] sm:$0xff] }
  0x53   :  { %261 = vmatprep.subr.mxu0 %v118_v36  ;;  %332 = vmatprep.subr.mxu1 %v120_v37  ;;  %v98_v56 = vld [vmem:[#allocation5 + $0x28] sm:$0xff]  ;;  %v100_v57 = vld [vmem:[#allocation5 + $0x38] sm:$0xff]  ;;  %v97_v58 = vld [vmem:[#allocation5 + $0x20] sm:$0xff] }
  0x54   :  { %262 = vmatpush1.msra.mxu0 %v117_v38  ;;  %333 = vmatpush1.msra.mxu1 %v119_v39  ;;  %v99_v59 = vld [vmem:[#allocation5 + $0x30] sm:$0xff]  ;;  %v94_v60 = vld [vmem:[#allocation5 + $0x8] sm:$0xff]  ;;  %v96_v61 = vld [vmem:[#allocation5 + $0x18] sm:$0xff] }
  0x55   :  { %263 = vmatprep.subr.mxu0 %v114_v40  ;;  %334 = vmatprep.subr.mxu1 %v116_v41  ;;  %v93_v62 = vld [vmem:[#allocation5] sm:$0xff]  ;;  %v95_v63 = vld [vmem:[#allocation5 + $0x10] sm:$0xff]  ;;  %v218_v0 = vld [vmem:[#allocation5 + $0x3e8] sm:$0xff] }
  0x56   :  { %264 = vmatpush1.msra.mxu0 %v113_v42  ;;  %335 = vmatpush1.msra.mxu1 %v115_v43  ;;  %v220_v1 = vld [vmem:[#allocation5 + $0x3f8] sm:$0xff]  ;;  %v217_v2 = vld [vmem:[#allocation5 + $0x3e0] sm:$0xff]  ;;  %v219_v3 = vld [vmem:[#allocation5 + $0x3f0] sm:$0xff] }
  0x57   :  { %265 = vmatprep.subr.mxu0 %v110_v44  ;;  %336 = vmatprep.subr.mxu1 %v112_v45  ;;  %v214_v4 = vld [vmem:[#allocation5 + $0x3c8] sm:$0xff]  ;;  %v216_v5 = vld [vmem:[#allocation5 + $0x3d8] sm:$0xff]  ;;  %v213_v6 = vld [vmem:[#allocation5 + $0x3c0] sm:$0xff] }
  0x58   :  { %266 = vmatpush1.msra.mxu0 %v109_v46  ;;  %337 = vmatpush1.msra.mxu1 %v111_v47  ;;  %v215_v7 = vld [vmem:[#allocation5 + $0x3d0] sm:$0xff]  ;;  %v210_v8 = vld [vmem:[#allocation5 + $0x3a8] sm:$0xff]  ;;  %v212_v9 = vld [vmem:[#allocation5 + $0x3b8] sm:$0xff] }
  0x59   :  { %267 = vmatprep.subr.mxu0 %v106_v48  ;;  %338 = vmatprep.subr.mxu1 %v108_v49  ;;  %v209_v10 = vld [vmem:[#allocation5 + $0x3a0] sm:$0xff]  ;;  %v211_v11 = vld [vmem:[#allocation5 + $0x3b0] sm:$0xff]  ;;  %v206_v12 = vld [vmem:[#allocation5 + $0x388] sm:$0xff] }
  0x5a   :  { %268 = vmatpush1.msra.mxu0 %v105_v50  ;;  %339 = vmatpush1.msra.mxu1 %v107_v51  ;;  %v208_v13 = vld [vmem:[#allocation5 + $0x398] sm:$0xff]  ;;  %v205_v14 = vld [vmem:[#allocation5 + $0x380] sm:$0xff]  ;;  %v207_v15 = vld [vmem:[#allocation5 + $0x390] sm:$0xff] }
  0x5b   :  { %269 = vmatprep.subr.mxu0 %v102_v52  ;;  %340 = vmatprep.subr.mxu1 %v104_v53  ;;  %v202_v16 = vld [vmem:[#allocation5 + $0x368] sm:$0xff]  ;;  %v204_v17 = vld [vmem:[#allocation5 + $0x378] sm:$0xff]  ;;  %v201_v18 = vld [vmem:[#allocation5 + $0x360] sm:$0xff] }
  0x5c   :  { %270 = vmatpush1.msra.mxu0 %v101_v54  ;;  %341 = vmatpush1.msra.mxu1 %v103_v55  ;;  %v203_v19 = vld [vmem:[#allocation5 + $0x370] sm:$0xff]  ;;  %v198_v20 = vld [vmem:[#allocation5 + $0x348] sm:$0xff]  ;;  %v200_v21 = vld [vmem:[#allocation5 + $0x358] sm:$0xff] }
  0x5d   :  { %271 = vmatprep.subr.mxu0 %v98_v56  ;;  %342 = vmatprep.subr.mxu1 %v100_v57  ;;  %v197_v22 = vld [vmem:[#allocation5 + $0x340] sm:$0xff]  ;;  %v199_v23 = vld [vmem:[#allocation5 + $0x350] sm:$0xff]  ;;  %v194_v24 = vld [vmem:[#allocation5 + $0x328] sm:$0xff] }
  0x5e   :  { %272 = vmatpush1.msra.mxu0 %v97_v58  ;;  %343 = vmatpush1.msra.mxu1 %v99_v59  ;;  %v196_v25 = vld [vmem:[#allocation5 + $0x338] sm:$0xff]  ;;  %v193_v26 = vld [vmem:[#allocation5 + $0x320] sm:$0xff]  ;;  %v195_v27 = vld [vmem:[#allocation5 + $0x330] sm:$0xff] }
  0x5f   :  { %273 = vmatprep.subr.mxu0 %v94_v60  ;;  %344 = vmatprep.subr.mxu1 %v96_v61  ;;  %v190_v28 = vld [vmem:[#allocation5 + $0x308] sm:$0xff]  ;;  %v192_v29 = vld [vmem:[#allocation5 + $0x318] sm:$0xff]  ;;  %v189_v30 = vld [vmem:[#allocation5 + $0x300] sm:$0xff] }
  0x60   :  { %274 = vmatpush1.msra.mxu0 %v93_v62  ;;  %345 = vmatpush1.msra.mxu1 %v95_v63  ;;  %v191_v31 = vld [vmem:[#allocation5 + $0x310] sm:$0xff]  ;;  %v186_v32 = vld [vmem:[#allocation5 + $0x2e8] sm:$0xff]  ;;  %v188_v33 = vld [vmem:[#allocation5 + $0x2f8] sm:$0xff] }
  0x61   :  { %275 = vmatprep.subr.mxu0 %v218_v0  ;;  %346 = vmatprep.subr.mxu1 %v220_v1  ;;  %v185_v34 = vld [vmem:[#allocation5 + $0x2e0] sm:$0xff]  ;;  %v187_v35 = vld [vmem:[#allocation5 + $0x2f0] sm:$0xff]  ;;  %v182_v36 = vld [vmem:[#allocation5 + $0x2c8] sm:$0xff] }
  0x62   :  { %276 = vmatpush2.msra.mxu0 %v217_v2  ;;  %347 = vmatpush2.msra.mxu1 %v219_v3  ;;  %v184_v37 = vld [vmem:[#allocation5 + $0x2d8] sm:$0xff]  ;;  %v181_v38 = vld [vmem:[#allocation5 + $0x2c0] sm:$0xff]  ;;  %v183_v39 = vld [vmem:[#allocation5 + $0x2d0] sm:$0xff] }
  0x63   :  { %277 = vmatprep.subr.mxu0 %v214_v4  ;;  %348 = vmatprep.subr.mxu1 %v216_v5  ;;  %v178_v40 = vld [vmem:[#allocation5 + $0x2a8] sm:$0xff]  ;;  %v180_v41 = vld [vmem:[#allocation5 + $0x2b8] sm:$0xff]  ;;  %v177_v42 = vld [vmem:[#allocation5 + $0x2a0] sm:$0xff] }
  0x64   :  { %278 = vmatpush2.msra.mxu0 %v213_v6  ;;  %349 = vmatpush2.msra.mxu1 %v215_v7  ;;  %v179_v43 = vld [vmem:[#allocation5 + $0x2b0] sm:$0xff]  ;;  %v174_v44 = vld [vmem:[#allocation5 + $0x288] sm:$0xff]  ;;  %v176_v45 = vld [vmem:[#allocation5 + $0x298] sm:$0xff] }
  0x65   :  { %279 = vmatprep.subr.mxu0 %v210_v8  ;;  %350 = vmatprep.subr.mxu1 %v212_v9  ;;  %v173_v46 = vld [vmem:[#allocation5 + $0x280] sm:$0xff]  ;;  %v175_v47 = vld [vmem:[#allocation5 + $0x290] sm:$0xff]  ;;  %v170_v48 = vld [vmem:[#allocation5 + $0x268] sm:$0xff] }
  0x66   :  { %280 = vmatpush2.msra.mxu0 %v209_v10  ;;  %351 = vmatpush2.msra.mxu1 %v211_v11  ;;  %v172_v49 = vld [vmem:[#allocation5 + $0x278] sm:$0xff]  ;;  %v169_v50 = vld [vmem:[#allocation5 + $0x260] sm:$0xff]  ;;  %v171_v51 = vld [vmem:[#allocation5 + $0x270] sm:$0xff] }
  0x67   :  { %281 = vmatprep.subr.mxu0 %v206_v12  ;;  %352 = vmatprep.subr.mxu1 %v208_v13  ;;  %v166_v52 = vld [vmem:[#allocation5 + $0x248] sm:$0xff]  ;;  %v168_v53 = vld [vmem:[#allocation5 + $0x258] sm:$0xff]  ;;  %v165_v54 = vld [vmem:[#allocation5 + $0x240] sm:$0xff] }
  0x68   :  { %282 = vmatpush2.msra.mxu0 %v205_v14  ;;  %353 = vmatpush2.msra.mxu1 %v207_v15  ;;  %v167_v55 = vld [vmem:[#allocation5 + $0x250] sm:$0xff]  ;;  %v162_v56 = vld [vmem:[#allocation5 + $0x228] sm:$0xff]  ;;  %v164_v57 = vld [vmem:[#allocation5 + $0x238] sm:$0xff] }
  0x69   :  { %283 = vmatprep.subr.mxu0 %v202_v16  ;;  %354 = vmatprep.subr.mxu1 %v204_v17  ;;  %v161_v58 = vld [vmem:[#allocation5 + $0x220] sm:$0xff]  ;;  %v163_v59 = vld [vmem:[#allocation5 + $0x230] sm:$0xff]  ;;  %v158_v60 = vld [vmem:[#allocation5 + $0x208] sm:$0xff] }
  0x6a   :  { %284 = vmatpush2.msra.mxu0 %v201_v18  ;;  %355 = vmatpush2.msra.mxu1 %v203_v19  ;;  %v160_v61 = vld [vmem:[#allocation5 + $0x218] sm:$0xff]  ;;  %v157_v62 = vld [vmem:[#allocation5 + $0x200] sm:$0xff]  ;;  %v159_v0 = vld [vmem:[#allocation5 + $0x210] sm:$0xff] }
  0x6b   :  { %285 = vmatprep.subr.mxu0 %v198_v20  ;;  %356 = vmatprep.subr.mxu1 %v200_v21  ;;  %v92_v63 = vld [vmem:[#allocation2 + $0x8] sm:$0xff]  ;;  %v91_v1 = vld [vmem:[#allocation2] sm:$0xff]  ;;  %v425_v8 = vld [vmem:[#allocation8 + $0xe0] sm:$0xff] }
  0x6c   :  { %286 = vmatpush2.msra.mxu0 %v197_v22  ;;  %357 = vmatpush2.msra.mxu1 %v199_v23  ;;  %v428_v2 = vld [vmem:[#allocation8 + $0xf8] sm:$0xff]  ;;  %v427_v4 = vld [vmem:[#allocation8 + $0xf0] sm:$0xff]  ;;  %v426_v6 = vld [vmem:[#allocation8 + $0xe8] sm:$0xff] }
  0x6d   :  { %287 = vmatprep.subr.mxu0 %v194_v24  ;;  %358 = vmatprep.subr.mxu1 %v196_v25  ;;  %v492_v3 = vld [vmem:[#allocation8 + $0x2f8] sm:$0xff]  ;;  %v491_v5 = vld [vmem:[#allocation8 + $0x2f0] sm:$0xff]  ;;  %v490_v7 = vld [vmem:[#allocation8 + $0x2e8] sm:$0xff] }
  0x6e   :  { %288 = vmatpush2.msra.mxu0 %v193_v26  ;;  %359 = vmatpush2.msra.mxu1 %v195_v27  ;;  %v489_v9 = vld [vmem:[#allocation8 + $0x2e0] sm:$0xff]  ;;  %v424_v10 = vld [vmem:[#allocation8 + $0xd8] sm:$0xff]  ;;  %v423_v12 = vld [vmem:[#allocation8 + $0xd0] sm:$0xff] }
  0x6f   :  { %289 = vmatprep.subr.mxu0 %v190_v28  ;;  %360 = vmatprep.subr.mxu1 %v192_v29  ;;  %v488_v11 = vld [vmem:[#allocation8 + $0x2d8] sm:$0xff]  ;;  %v487_v13 = vld [vmem:[#allocation8 + $0x2d0] sm:$0xff]  ;;  %v422_v14 = vld [vmem:[#allocation8 + $0xc8] sm:$0xff] }
  0x70   :  { %290 = vmatpush2.msra.mxu0 %v189_v30  ;;  %361 = vmatpush2.msra.mxu1 %v191_v31  ;;  %v486_v15 = vld [vmem:[#allocation8 + $0x2c8] sm:$0xff]  ;;  %v421_v16 = vld [vmem:[#allocation8 + $0xc0] sm:$0xff]  ;;  %v420_v18 = vld [vmem:[#allocation8 + $0xb8] sm:$0xff] }
  0x71   :  { %291 = vmatprep.subr.mxu0 %v186_v32  ;;  %362 = vmatprep.subr.mxu1 %v188_v33  ;;  %v485_v17 = vld [vmem:[#allocation8 + $0x2c0] sm:$0xff]  ;;  %v484_v19 = vld [vmem:[#allocation8 + $0x2b8] sm:$0xff]  ;;  %v419_v20 = vld [vmem:[#allocation8 + $0xb0] sm:$0xff] }
  0x72   :  { %292 = vmatpush2.msra.mxu0 %v185_v34  ;;  %363 = vmatpush2.msra.mxu1 %v187_v35  ;;  %v483_v21 = vld [vmem:[#allocation8 + $0x2b0] sm:$0xff]  ;;  %v418_v22 = vld [vmem:[#allocation8 + $0xa8] sm:$0xff]  ;;  %v417_v24 = vld [vmem:[#allocation8 + $0xa0] sm:$0xff] }
  0x73   :  { %293 = vmatprep.subr.mxu0 %v182_v36  ;;  %364 = vmatprep.subr.mxu1 %v184_v37  ;;  %v482_v23 = vld [vmem:[#allocation8 + $0x2a8] sm:$0xff]  ;;  %v481_v25 = vld [vmem:[#allocation8 + $0x2a0] sm:$0xff]  ;;  %v416_v26 = vld [vmem:[#allocation8 + $0x98] sm:$0xff] }
  0x74   :  { %294 = vmatpush2.msra.mxu0 %v181_v38  ;;  %365 = vmatpush2.msra.mxu1 %v183_v39  ;;  %v480_v27 = vld [vmem:[#allocation8 + $0x298] sm:$0xff]  ;;  %v415_v28 = vld [vmem:[#allocation8 + $0x90] sm:$0xff]  ;;  %v414_v30 = vld [vmem:[#allocation8 + $0x88] sm:$0xff] }
  0x75   :  { %295 = vmatprep.subr.mxu0 %v178_v40  ;;  %366 = vmatprep.subr.mxu1 %v180_v41  ;;  %v479_v29 = vld [vmem:[#allocation8 + $0x290] sm:$0xff]  ;;  %v478_v31 = vld [vmem:[#allocation8 + $0x288] sm:$0xff]  ;;  %v413_v32 = vld [vmem:[#allocation8 + $0x80] sm:$0xff] }
  0x76   :  { %296 = vmatpush2.msra.mxu0 %v177_v42  ;;  %367 = vmatpush2.msra.mxu1 %v179_v43  ;;  %v477_v33 = vld [vmem:[#allocation8 + $0x280] sm:$0xff]  ;;  %v412_v34 = vld [vmem:[#allocation8 + $0x78] sm:$0xff]  ;;  %v411_v36 = vld [vmem:[#allocation8 + $0x70] sm:$0xff] }
  0x77   :  { %297 = vmatprep.subr.mxu0 %v174_v44  ;;  %368 = vmatprep.subr.mxu1 %v176_v45  ;;  %v476_v35 = vld [vmem:[#allocation8 + $0x278] sm:$0xff]  ;;  %v475_v37 = vld [vmem:[#allocation8 + $0x270] sm:$0xff]  ;;  %v410_v38 = vld [vmem:[#allocation8 + $0x68] sm:$0xff] }
  0x78   :  { %298 = vmatpush2.msra.mxu0 %v173_v46  ;;  %369 = vmatpush2.msra.mxu1 %v175_v47  ;;  %v474_v39 = vld [vmem:[#allocation8 + $0x268] sm:$0xff]  ;;  %v409_v40 = vld [vmem:[#allocation8 + $0x60] sm:$0xff]  ;;  %v408_v42 = vld [vmem:[#allocation8 + $0x58] sm:$0xff] }
  0x79   :  { %299 = vmatprep.subr.mxu0 %v170_v48  ;;  %370 = vmatprep.subr.mxu1 %v172_v49  ;;  %v473_v41 = vld [vmem:[#allocation8 + $0x260] sm:$0xff]  ;;  %v472_v43 = vld [vmem:[#allocation8 + $0x258] sm:$0xff]  ;;  %v407_v44 = vld [vmem:[#allocation8 + $0x50] sm:$0xff] }
  0x7a   :  { %300 = vmatpush2.msra.mxu0 %v169_v50  ;;  %371 = vmatpush2.msra.mxu1 %v171_v51  ;;  %v471_v45 = vld [vmem:[#allocation8 + $0x250] sm:$0xff]  ;;  %v406_v46 = vld [vmem:[#allocation8 + $0x48] sm:$0xff]  ;;  %v405_v48 = vld [vmem:[#allocation8 + $0x40] sm:$0xff] }
  0x7b   :  { %301 = vmatprep.subr.mxu0 %v166_v52  ;;  %372 = vmatprep.subr.mxu1 %v168_v53  ;;  %v470_v47 = vld [vmem:[#allocation8 + $0x248] sm:$0xff]  ;;  %v469_v49 = vld [vmem:[#allocation8 + $0x240] sm:$0xff]  ;;  %v404_v50 = vld [vmem:[#allocation8 + $0x38] sm:$0xff] }
  0x7c   :  { %302 = vmatpush2.msra.mxu0 %v165_v54  ;;  %373 = vmatpush2.msra.mxu1 %v167_v55  ;;  %v468_v51 = vld [vmem:[#allocation8 + $0x238] sm:$0xff]  ;;  %v403_v52 = vld [vmem:[#allocation8 + $0x30] sm:$0xff]  ;;  %v402_v54 = vld [vmem:[#allocation8 + $0x28] sm:$0xff] }
  0x7d   :  { %303 = vmatprep.subr.mxu0 %v162_v56  ;;  %374 = vmatprep.subr.mxu1 %v164_v57  ;;  %v467_v53 = vld [vmem:[#allocation8 + $0x230] sm:$0xff]  ;;  %v466_v55 = vld [vmem:[#allocation8 + $0x228] sm:$0xff]  ;;  %v401_v56 = vld [vmem:[#allocation8 + $0x20] sm:$0xff] }
  0x7e   :  { %304 = vmatpush2.msra.mxu0 %v161_v58  ;;  %375 = vmatpush2.msra.mxu1 %v163_v59  ;;  %v465_v57 = vld [vmem:[#allocation8 + $0x220] sm:$0xff]  ;;  %v400_v58 = vld [vmem:[#allocation8 + $0x18] sm:$0xff] }
  0x7f   :  { %305 = vmatprep.subr.mxu0 %v158_v60  ;;  %376 = vmatprep.subr.mxu1 %v160_v61  ;;  %v464_v59 = vld [vmem:[#allocation8 + $0x218] sm:$0xff]  ;;  %v399_v60 = vld [vmem:[#allocation8 + $0x10] sm:$0xff] }
  0x80   :  { %306 = vmatpush2.msra.mxu0 %v157_v62  ;;  %307 = vmatprep.mubr.f32.mxu0 %v92_v63  ;;  %v463_v61 = vld [vmem:[#allocation8 + $0x210] sm:$0xff]  ;;  %v398_v62 = vld [vmem:[#allocation8 + $0x8] sm:$0xff] }
  0x81   :  { %377 = vmatpush2.msra.mxu1 %v159_v0  ;;  %378 = vmatprep.mubr.f32.mxu1 %v92_v63  ;;  %v462_v63 = vld [vmem:[#allocation8 + $0x208] sm:$0xff]  ;;  %v397_v0 = vld [vmem:[#allocation8] sm:$0xff] }
  0x82   :  { %308 = vmatmul.mubr.f32.vlgmr.msra.gmra.mxu0 %v91_v1  ;;  %379 = vmatmul.mubr.f32.vlgmr.msra.gmra.mxu1 %v91_v1  ;;  %v461_v1 = vld [vmem:[#allocation8 + $0x200] sm:$0xff] }
  0x83   :  { %537 = vmatprep.subr.mxu0 %v428_v2  ;;  %608 = vmatprep.subr.mxu1 %v492_v3  ;;  %v460_v2 = vld [vmem:[#allocation8 + $0x1f8] sm:$0xff] }
  0x84   :  { %538 = vmatpush1.msra.mxu0 %v427_v4  ;;  %609 = vmatpush1.msra.mxu1 %v491_v5  ;;  %v524_v3 = vld [vmem:[#allocation8 + $0x3f8] sm:$0xff]  ;;  %v459_v4 = vld [vmem:[#allocation8 + $0x1f0] sm:$0xff] }
  0x85   :  { %539 = vmatprep.subr.mxu0 %v426_v6  ;;  %610 = vmatprep.subr.mxu1 %v490_v7  ;;  %v523_v5 = vld [vmem:[#allocation8 + $0x3f0] sm:$0xff]  ;;  %v458_v6 = vld [vmem:[#allocation8 + $0x1e8] sm:$0xff] }
  0x86   :  { %540 = vmatpush1.msra.mxu0 %v425_v8  ;;  %611 = vmatpush1.msra.mxu1 %v489_v9  ;;  %v522_v7 = vld [vmem:[#allocation8 + $0x3e8] sm:$0xff]  ;;  %v457_v8 = vld [vmem:[#allocation8 + $0x1e0] sm:$0xff] }
  0x87   :  { %541 = vmatprep.subr.mxu0 %v424_v10  ;;  %612 = vmatprep.subr.mxu1 %v488_v11  ;;  %v521_v9 = vld [vmem:[#allocation8 + $0x3e0] sm:$0xff]  ;;  %v456_v10 = vld [vmem:[#allocation8 + $0x1d8] sm:$0xff] }
  0x88   :  { %542 = vmatpush1.msra.mxu0 %v423_v12  ;;  %613 = vmatpush1.msra.mxu1 %v487_v13  ;;  %v520_v11 = vld [vmem:[#allocation8 + $0x3d8] sm:$0xff]  ;;  %v455_v12 = vld [vmem:[#allocation8 + $0x1d0] sm:$0xff] }
  0x89   :  { %543 = vmatprep.subr.mxu0 %v422_v14  ;;  %614 = vmatprep.subr.mxu1 %v486_v15  ;;  %v519_v13 = vld [vmem:[#allocation8 + $0x3d0] sm:$0xff]  ;;  %v454_v14 = vld [vmem:[#allocation8 + $0x1c8] sm:$0xff] }
  0x8a   :  { %544 = vmatpush1.msra.mxu0 %v421_v16  ;;  %615 = vmatpush1.msra.mxu1 %v485_v17  ;;  %v518_v15 = vld [vmem:[#allocation8 + $0x3c8] sm:$0xff]  ;;  %v453_v16 = vld [vmem:[#allocation8 + $0x1c0] sm:$0xff] }
  0x8b   :  { %545 = vmatprep.subr.mxu0 %v420_v18  ;;  %616 = vmatprep.subr.mxu1 %v484_v19  ;;  %v517_v17 = vld [vmem:[#allocation8 + $0x3c0] sm:$0xff]  ;;  %v452_v18 = vld [vmem:[#allocation8 + $0x1b8] sm:$0xff] }
  0x8c   :  { %546 = vmatpush1.msra.mxu0 %v419_v20  ;;  %617 = vmatpush1.msra.mxu1 %v483_v21  ;;  %v516_v19 = vld [vmem:[#allocation8 + $0x3b8] sm:$0xff]  ;;  %v451_v20 = vld [vmem:[#allocation8 + $0x1b0] sm:$0xff] }
  0x8d   :  { %547 = vmatprep.subr.mxu0 %v418_v22  ;;  %618 = vmatprep.subr.mxu1 %v482_v23  ;;  %v515_v21 = vld [vmem:[#allocation8 + $0x3b0] sm:$0xff]  ;;  %v450_v22 = vld [vmem:[#allocation8 + $0x1a8] sm:$0xff] }
  0x8e   :  { %548 = vmatpush1.msra.mxu0 %v417_v24  ;;  %619 = vmatpush1.msra.mxu1 %v481_v25  ;;  %v514_v23 = vld [vmem:[#allocation8 + $0x3a8] sm:$0xff]  ;;  %v449_v24 = vld [vmem:[#allocation8 + $0x1a0] sm:$0xff] }
  0x8f   :  { %549 = vmatprep.subr.mxu0 %v416_v26  ;;  %620 = vmatprep.subr.mxu1 %v480_v27  ;;  %v513_v25 = vld [vmem:[#allocation8 + $0x3a0] sm:$0xff]  ;;  %v448_v26 = vld [vmem:[#allocation8 + $0x198] sm:$0xff] }
  0x90   :  { %550 = vmatpush1.msra.mxu0 %v415_v28  ;;  %621 = vmatpush1.msra.mxu1 %v479_v29  ;;  %v512_v27 = vld [vmem:[#allocation8 + $0x398] sm:$0xff]  ;;  %v447_v28 = vld [vmem:[#allocation8 + $0x190] sm:$0xff] }
  0x91   :  { %551 = vmatprep.subr.mxu0 %v414_v30  ;;  %622 = vmatprep.subr.mxu1 %v478_v31  ;;  %v511_v29 = vld [vmem:[#allocation8 + $0x390] sm:$0xff]  ;;  %v446_v30 = vld [vmem:[#allocation8 + $0x188] sm:$0xff] }
  0x92   :  { %552 = vmatpush1.msra.mxu0 %v413_v32  ;;  %623 = vmatpush1.msra.mxu1 %v477_v33  ;;  %v510_v31 = vld [vmem:[#allocation8 + $0x388] sm:$0xff]  ;;  %v445_v32 = vld [vmem:[#allocation8 + $0x180] sm:$0xff] }
  0x93   :  { %553 = vmatprep.subr.mxu0 %v412_v34  ;;  %624 = vmatprep.subr.mxu1 %v476_v35  ;;  %v509_v33 = vld [vmem:[#allocation8 + $0x380] sm:$0xff]  ;;  %v444_v34 = vld [vmem:[#allocation8 + $0x178] sm:$0xff] }
  0x94   :  { %554 = vmatpush1.msra.mxu0 %v411_v36  ;;  %625 = vmatpush1.msra.mxu1 %v475_v37  ;;  %v508_v35 = vld [vmem:[#allocation8 + $0x378] sm:$0xff]  ;;  %v443_v36 = vld [vmem:[#allocation8 + $0x170] sm:$0xff] }
  0x95   :  { %555 = vmatprep.subr.mxu0 %v410_v38  ;;  %626 = vmatprep.subr.mxu1 %v474_v39  ;;  %v507_v37 = vld [vmem:[#allocation8 + $0x370] sm:$0xff]  ;;  %v442_v38 = vld [vmem:[#allocation8 + $0x168] sm:$0xff] }
  0x96   :  { %556 = vmatpush1.msra.mxu0 %v409_v40  ;;  %627 = vmatpush1.msra.mxu1 %v473_v41  ;;  %v506_v39 = vld [vmem:[#allocation8 + $0x368] sm:$0xff]  ;;  %v441_v40 = vld [vmem:[#allocation8 + $0x160] sm:$0xff] }
  0x97   :  { %557 = vmatprep.subr.mxu0 %v408_v42  ;;  %628 = vmatprep.subr.mxu1 %v472_v43  ;;  %v505_v41 = vld [vmem:[#allocation8 + $0x360] sm:$0xff]  ;;  %v440_v42 = vld [vmem:[#allocation8 + $0x158] sm:$0xff] }
  0x98   :  { %558 = vmatpush1.msra.mxu0 %v407_v44  ;;  %629 = vmatpush1.msra.mxu1 %v471_v45  ;;  %v504_v43 = vld [vmem:[#allocation8 + $0x358] sm:$0xff]  ;;  %v439_v44 = vld [vmem:[#allocation8 + $0x150] sm:$0xff] }
  0x99   :  { %559 = vmatprep.subr.mxu0 %v406_v46  ;;  %630 = vmatprep.subr.mxu1 %v470_v47  ;;  %v503_v45 = vld [vmem:[#allocation8 + $0x350] sm:$0xff]  ;;  %v438_v46 = vld [vmem:[#allocation8 + $0x148] sm:$0xff] }
  0x9a   :  { %560 = vmatpush1.msra.mxu0 %v405_v48  ;;  %631 = vmatpush1.msra.mxu1 %v469_v49  ;;  %v502_v47 = vld [vmem:[#allocation8 + $0x348] sm:$0xff]  ;;  %v437_v48 = vld [vmem:[#allocation8 + $0x140] sm:$0xff] }
  0x9b   :  { %561 = vmatprep.subr.mxu0 %v404_v50  ;;  %632 = vmatprep.subr.mxu1 %v468_v51  ;;  %v501_v49 = vld [vmem:[#allocation8 + $0x340] sm:$0xff]  ;;  %v436_v50 = vld [vmem:[#allocation8 + $0x138] sm:$0xff] }
  0x9c   :  { %562 = vmatpush1.msra.mxu0 %v403_v52  ;;  %633 = vmatpush1.msra.mxu1 %v467_v53  ;;  %v500_v51 = vld [vmem:[#allocation8 + $0x338] sm:$0xff]  ;;  %v435_v52 = vld [vmem:[#allocation8 + $0x130] sm:$0xff] }
  0x9d   :  { %563 = vmatprep.subr.mxu0 %v402_v54  ;;  %634 = vmatprep.subr.mxu1 %v466_v55  ;;  %v499_v53 = vld [vmem:[#allocation8 + $0x330] sm:$0xff]  ;;  %v434_v54 = vld [vmem:[#allocation8 + $0x128] sm:$0xff] }
  0x9e   :  { %564 = vmatpush1.msra.mxu0 %v401_v56  ;;  %635 = vmatpush1.msra.mxu1 %v465_v57  ;;  %v498_v55 = vld [vmem:[#allocation8 + $0x328] sm:$0xff]  ;;  %v433_v56 = vld [vmem:[#allocation8 + $0x120] sm:$0xff] }
  0x9f   :  { %565 = vmatprep.subr.mxu0 %v400_v58  ;;  %636 = vmatprep.subr.mxu1 %v464_v59  ;;  %v497_v57 = vld [vmem:[#allocation8 + $0x320] sm:$0xff]  ;;  %v432_v58 = vld [vmem:[#allocation8 + $0x118] sm:$0xff] }
  0xa0   :  { %566 = vmatpush1.msra.mxu0 %v399_v60  ;;  %637 = vmatpush1.msra.mxu1 %v463_v61  ;;  %v496_v59 = vld [vmem:[#allocation8 + $0x318] sm:$0xff]  ;;  %v431_v60 = vld [vmem:[#allocation8 + $0x110] sm:$0xff] }
  0xa1   :  { %567 = vmatprep.subr.mxu0 %v398_v62  ;;  %638 = vmatprep.subr.mxu1 %v462_v63  ;;  %v495_v61 = vld [vmem:[#allocation8 + $0x310] sm:$0xff]  ;;  %v430_v62 = vld [vmem:[#allocation8 + $0x108] sm:$0xff] }
  0xa2   :  { %568 = vmatpush1.msra.mxu0 %v397_v0  ;;  %639 = vmatpush1.msra.mxu1 %v461_v1  ;;  %v494_v63 = vld [vmem:[#allocation8 + $0x308] sm:$0xff]  ;;  %v429_v0 = vld [vmem:[#allocation8 + $0x100] sm:$0xff] }
  0xa3   :  { %569 = vmatprep.subr.mxu0 %v460_v2  ;;  %640 = vmatprep.subr.mxu1 %v524_v3  ;;  %v493_v1 = vld [vmem:[#allocation8 + $0x300] sm:$0xff]  ;;  %v716_v2 = vld [vmem:[#allocation10 + $0xf8] sm:$0xff]  ;;  %v223_v3 = vlaneseq }
  0xa4   :  { %570 = vmatpush2.msra.mxu0 %v459_v4  ;;  %641 = vmatpush2.msra.mxu1 %v523_v5 }
  0xa5   :  { %571 = vmatprep.subr.mxu0 %v458_v6  ;;  %642 = vmatprep.subr.mxu1 %v522_v7  ;;  %v1068_v4 = vshrl.u32 %v223_v3, 7  ;;  %v221_v7 = vld [vmem:[#allocation7] sm:$0xf] }
  0xa6   :  { %572 = vmatpush2.msra.mxu0 %v457_v8  ;;  %643 = vmatpush2.msra.mxu1 %v521_v9 }
  0xa7   :  { %573 = vmatprep.subr.mxu0 %v456_v10  ;;  %644 = vmatprep.subr.mxu1 %v520_v11  ;;  %v225_v5 = vsub.s32 0, %v1068_v4  ;;  %v233_v6 = vsub.s32 2, %v1068_v4  ;;  %v229_v8 = vsub.s32 1, %v1068_v4  ;;  %v237_v9 = vsub.s32 3, %v1068_v4  ;;  %v821_v4 = vld [vmem:[%s1097_s6] ss:$0 sm:$0xff] }
  0xa8   :  { %574 = vmatpush2.msra.mxu0 %v455_v12  ;;  %645 = vmatpush2.msra.mxu1 %v519_v13 }
  0xa9   :  { %575 = vmatprep.subr.mxu0 %v454_v14  ;;  %646 = vmatprep.subr.mxu1 %v518_v15  ;;  %v226_v10 = vrot.slane %v221_v7, %v225_v5  ;;  %v234_v11 = vrot.slane %v221_v7, %v233_v6  ;;  %v230_v14 = vrot.slane %v221_v7, %v229_v8 }
  0xaa   :  { %576 = vmatpush2.msra.mxu0 %v453_v16  ;;  %647 = vmatpush2.msra.mxu1 %v517_v17  ;;  %v238_v15 = vrot.slane %v221_v7, %v237_v9 }
  0xab   :  { %577 = vmatprep.subr.mxu0 %v452_v18  ;;  %648 = vmatprep.subr.mxu1 %v516_v19 }
  0xac   :  { %578 = vmatpush2.msra.mxu0 %v451_v20  ;;  %649 = vmatpush2.msra.mxu1 %v515_v21 }
  0xad   :  { %579 = vmatprep.subr.mxu0 %v450_v22  ;;  %650 = vmatprep.subr.mxu1 %v514_v23 }
  0xae   :  { %580 = vmatpush2.msra.mxu0 %v449_v24  ;;  %651 = vmatpush2.msra.mxu1 %v513_v25 }
  0xaf   :  { %581 = vmatprep.subr.mxu0 %v448_v26  ;;  %652 = vmatprep.subr.mxu1 %v512_v27 }
  0xb0   :  { %582 = vmatpush2.msra.mxu0 %v447_v28  ;;  %653 = vmatpush2.msra.mxu1 %v511_v29  ;;  %v700_v28 = vld [vmem:[#allocation10 + $0x78] sm:$0xff] }
  0xb1   :  { %583 = vmatprep.subr.mxu0 %v446_v30  ;;  %654 = vmatprep.subr.mxu1 %v510_v31  ;;  %v715_v31 = vld [vmem:[#allocation10 + $0xf0] sm:$0xff] }
  0xb2   :  { %584 = vmatpush2.msra.mxu0 %v445_v32  ;;  %655 = vmatpush2.msra.mxu1 %v509_v33  ;;  %v699_v32 = vld [vmem:[#allocation10 + $0x70] sm:$0xff]  ;;  %v714_v33 = vld [vmem:[#allocation10 + $0xe8] sm:$0xff] }
  0xb3   :  { %585 = vmatprep.subr.mxu0 %v444_v34  ;;  %656 = vmatprep.subr.mxu1 %v508_v35  ;;  %v698_v34 = vld [vmem:[#allocation10 + $0x68] sm:$0xff]  ;;  %v713_v35 = vld [vmem:[#allocation10 + $0xe0] sm:$0xff] }
  0xb4   :  { %586 = vmatpush2.msra.mxu0 %v443_v36  ;;  %657 = vmatpush2.msra.mxu1 %v507_v37  ;;  %v697_v36 = vld [vmem:[#allocation10 + $0x60] sm:$0xff]  ;;  %v712_v37 = vld [vmem:[#allocation10 + $0xd8] sm:$0xff] }
  0xb5   :  { %587 = vmatprep.subr.mxu0 %v442_v38  ;;  %658 = vmatprep.subr.mxu1 %v506_v39  ;;  %v696_v38 = vld [vmem:[#allocation10 + $0x58] sm:$0xff]  ;;  %v711_v39 = vld [vmem:[#allocation10 + $0xd0] sm:$0xff] }
  0xb6   :  { %588 = vmatpush2.msra.mxu0 %v441_v40  ;;  %659 = vmatpush2.msra.mxu1 %v505_v41  ;;  %v695_v40 = vld [vmem:[#allocation10 + $0x50] sm:$0xff]  ;;  %v710_v41 = vld [vmem:[#allocation10 + $0xc8] sm:$0xff] }
  0xb7   :  { %589 = vmatprep.subr.mxu0 %v440_v42  ;;  %660 = vmatprep.subr.mxu1 %v504_v43  ;;  %v694_v42 = vld [vmem:[#allocation10 + $0x48] sm:$0xff]  ;;  %v709_v43 = vld [vmem:[#allocation10 + $0xc0] sm:$0xff] }
  0xb8   :  { %590 = vmatpush2.msra.mxu0 %v439_v44  ;;  %661 = vmatpush2.msra.mxu1 %v503_v45  ;;  %v693_v44 = vld [vmem:[#allocation10 + $0x40] sm:$0xff]  ;;  %v708_v45 = vld [vmem:[#allocation10 + $0xb8] sm:$0xff] }
  0xb9   :  { %591 = vmatprep.subr.mxu0 %v438_v46  ;;  %662 = vmatprep.subr.mxu1 %v502_v47  ;;  %v692_v46 = vld [vmem:[#allocation10 + $0x38] sm:$0xff]  ;;  %v707_v47 = vld [vmem:[#allocation10 + $0xb0] sm:$0xff] }
  0xba   :  { %592 = vmatpush2.msra.mxu0 %v437_v48  ;;  %663 = vmatpush2.msra.mxu1 %v501_v49  ;;  %v691_v48 = vld [vmem:[#allocation10 + $0x30] sm:$0xff]  ;;  %v706_v49 = vld [vmem:[#allocation10 + $0xa8] sm:$0xff] }
  0xbb   :  { %593 = vmatprep.subr.mxu0 %v436_v50  ;;  %664 = vmatprep.subr.mxu1 %v500_v51  ;;  %v690_v50 = vld [vmem:[#allocation10 + $0x28] sm:$0xff]  ;;  %v705_v51 = vld [vmem:[#allocation10 + $0xa0] sm:$0xff] }
  0xbc   :  { %594 = vmatpush2.msra.mxu0 %v435_v52  ;;  %665 = vmatpush2.msra.mxu1 %v499_v53  ;;  %v689_v52 = vld [vmem:[#allocation10 + $0x20] sm:$0xff]  ;;  %v704_v53 = vld [vmem:[#allocation10 + $0x98] sm:$0xff] }
  0xbd   :  { %595 = vmatprep.subr.mxu0 %v434_v54  ;;  %666 = vmatprep.subr.mxu1 %v498_v55  ;;  %v688_v54 = vld [vmem:[#allocation10 + $0x18] sm:$0xff]  ;;  %v703_v55 = vld [vmem:[#allocation10 + $0x90] sm:$0xff] }
  0xbe   :  { %596 = vmatpush2.msra.mxu0 %v433_v56  ;;  %667 = vmatpush2.msra.mxu1 %v497_v57  ;;  %v687_v56 = vld [vmem:[#allocation10 + $0x10] sm:$0xff]  ;;  %v702_v57 = vld [vmem:[#allocation10 + $0x88] sm:$0xff] }
  0xbf   :  { %597 = vmatprep.subr.mxu0 %v432_v58  ;;  %668 = vmatprep.subr.mxu1 %v496_v59  ;;  %v686_v58 = vld [vmem:[#allocation10 + $0x8] sm:$0xff]  ;;  %v701_v59 = vld [vmem:[#allocation10 + $0x80] sm:$0xff] }
  0xc0   :  { %598 = vmatpush2.msra.mxu0 %v431_v60  ;;  %669 = vmatpush2.msra.mxu1 %v495_v61  ;;  %v685_v60 = vld [vmem:[#allocation10] sm:$0xff]  ;;  %v525_v61 = vld [vmem:[%s1095_s4] sm:$0x3] }
  0xc1   :  { %599 = vmatprep.subr.mxu0 %v430_v62  ;;  %670 = vmatprep.subr.mxu1 %v494_v63  ;;  %v530_v62 = vrot.slane %v525_v61, %v225_v5  ;;  %v534_v63 = vrot.slane %v525_v61, %v229_v8 }
  0xc2   :  { %600 = vmatpush2.msra.mxu0 %v429_v0  ;;  %671 = vmatpush2.msra.mxu1 %v493_v1 }
  0xc3   :  { %822 = vmatprep.subr.mxu0 %v716_v2 }
 0x142   :  { %v309_v12 = vpop.f32.mrf.mxu0  ;;  %v380_v13 = vpop.f32.mrf.mxu1 }
 0x143   :  { %v310_v16 = vadd.f32 %v309_v12, %v226_v10  ;;  %v381_v17 = vadd.f32 %v380_v13, %v234_v11 }
 0x144   :  { %v311_v18 = vpop.f32.mrf.mxu0  ;;  %v382_v19 = vpop.f32.mrf.mxu1 }
 0x145   :  { %v312_v20 = vadd.f32 %v311_v18, %v230_v14  ;;  %v383_v21 = vadd.f32 %v382_v19, %v238_v15  ;;  %vm385_vm0 = vcmp.gt.f32.partialorder %v310_v16, 0.0  ;;  %v389_v22 = vmul.f32 0.2, %v310_v16 }
 0x146   :  { %vm387_vm1 = vcmp.gt.f32.partialorder %v381_v17, 0.0  ;;  %v391_v23 = vmul.f32 0.2, %v381_v17 }
 0x147   :  { %v390_v24 = vmul.f32 0.2, %v312_v20  ;;  %v392_v25 = vmul.f32 0.2, %v383_v21  ;;  %vm386_vm2 = vcmp.gt.f32.partialorder %v312_v20, 0.0  ;;  %vm388_vm3 = vcmp.gt.f32.partialorder %v383_v21, 0.0 }
 0x148   :  { %v393_v29 = vsel %vm385_vm0, %v310_v16, %v389_v22  ;;  %v395_v30 = vsel %vm387_vm1, %v381_v17, %v391_v23 }
 0x149   :  { %v394_v26 = vsel %vm386_vm2, %v312_v20, %v390_v24  ;;  %v396_v27 = vsel %vm388_vm3, %v383_v21, %v392_v25 }
 0x14a   :  { %601 = vmatprep.mubr.f32.mxu0 %v394_v26  ;;  %672 = vmatprep.mubr.f32.mxu1 %v396_v27 }
 0x14b   :  { %602 = vmatmul.mubr.f32.vlgmr.msra.gmra.mxu0 %v393_v29  ;;  %673 = vmatmul.mubr.f32.vlgmr.msra.gmra.mxu1 %v395_v30 }
 0x14c   :  { %823 = vmatpush3.msra.mxu0 %v700_v28 }
 0x14d   :  { %824 = vmatprep.subr.mxu0 %v715_v31 }
 0x14e   :  { %825 = vmatpush3.msra.mxu0 %v699_v32 }
 0x14f   :  { %826 = vmatprep.subr.mxu0 %v714_v33 }
 0x150   :  { %827 = vmatpush3.msra.mxu0 %v698_v34 }
 0x151   :  { %828 = vmatprep.subr.mxu0 %v713_v35 }
 0x152   :  { %829 = vmatpush3.msra.mxu0 %v697_v36 }
 0x153   :  { %830 = vmatprep.subr.mxu0 %v712_v37 }
 0x154   :  { %831 = vmatpush3.msra.mxu0 %v696_v38 }
 0x155   :  { %832 = vmatprep.subr.mxu0 %v711_v39 }
 0x156   :  { %833 = vmatpush3.msra.mxu0 %v695_v40 }
 0x157   :  { %834 = vmatprep.subr.mxu0 %v710_v41 }
 0x158   :  { %835 = vmatpush3.msra.mxu0 %v694_v42 }
 0x159   :  { %836 = vmatprep.subr.mxu0 %v709_v43 }
 0x15a   :  { %837 = vmatpush3.msra.mxu0 %v693_v44 }
 0x15b   :  { %838 = vmatprep.subr.mxu0 %v708_v45 }
 0x15c   :  { %839 = vmatpush3.msra.mxu0 %v692_v46 }
 0x15d   :  { %840 = vmatprep.subr.mxu0 %v707_v47 }
 0x15e   :  { %841 = vmatpush3.msra.mxu0 %v691_v48 }
 0x15f   :  { %842 = vmatprep.subr.mxu0 %v706_v49 }
 0x160   :  { %843 = vmatpush3.msra.mxu0 %v690_v50 }
 0x161   :  { %844 = vmatprep.subr.mxu0 %v705_v51 }
 0x162   :  { %845 = vmatpush3.msra.mxu0 %v689_v52 }
 0x163   :  { %846 = vmatprep.subr.mxu0 %v704_v53 }
 0x164   :  { %847 = vmatpush3.msra.mxu0 %v688_v54 }
 0x165   :  { %848 = vmatprep.subr.mxu0 %v703_v55 }
 0x166   :  { %849 = vmatpush3.msra.mxu0 %v687_v56 }
 0x167   :  { %850 = vmatprep.subr.mxu0 %v702_v57 }
 0x168   :  { %851 = vmatpush3.msra.mxu0 %v686_v58 }
 0x169   :  { %852 = vmatprep.subr.mxu0 %v701_v59 }
 0x16a   :  { %853 = vmatpush3.msra.mxu0 %v685_v60 }
 0x20b   :  { %v603_v0 = vpop.f32.mrf.mxu0  ;;  %v674_v1 = vpop.f32.mrf.mxu1 }
 0x20c   :  { %v604_v2 = vadd.f32 %v603_v0, %v530_v62 }
 0x20d   :  { %v605_v3 = vpop.f32.mrf.mxu0  ;;  %v676_v9 = vpop.f32.mrf.mxu1 }
 0x20e   :  { %v675_v6 = vadd.f32 %v674_v1, %v604_v2  ;;  %v606_v7 = vadd.f32 %v605_v3, %v534_v63 }
 0x210   :  { %v677_v10 = vadd.f32 %v676_v9, %v606_v7  ;;  %v681_v11 = vmul.f32 0.2, %v675_v6  ;;  %vm679_vm4 = vcmp.gt.f32.partialorder %v675_v6, 0.0 }
 0x212   :  { %v682_v12 = vmul.f32 0.2, %v677_v10  ;;  %vm680_vm5 = vcmp.gt.f32.partialorder %v677_v10, 0.0  ;;  %v683_v14 = vsel %vm679_vm4, %v675_v6, %v681_v11 }
 0x214   :  { %v684_v13 = vsel %vm680_vm5, %v677_v10, %v682_v12 }
 0x215   :  { %788 = vmatprep.mubr.f32.mxu0 %v684_v13 }
 0x216   :  { %789 = vmatmul.mubr.f32.vlgmr.msra.gmra.mxu0 %v683_v14 }
 0x2d6   :  { %v854_v5 = vpop.f32.mrf.mxu0 }
 0x2d8   :  { %v855_v8 = vpop.f32.mrf.mxu0 }
 0x2d9   :  { %v856_v15 = vadd.f32 %v855_v8, %v854_v5 }
 0x2db   :  { %v791_v16 = vadd.f32 %v856_v15, %v821_v4 }
 0x2dd   :  { %v794_v17 = vand.u32 2147483647, %v791_v16  ;;  %vm800_vm6 = vcmp.ge.f32.partialorder %v791_v16, 0.0 }
 0x2df   :  { %v795_v18 = vsub.f32 0.0, %v794_v17 }
 0x2e1   :  { %v796_v19 = vmul.f32 1.442695, %v795_v18 }
 0x2e3   :  { %869 = vpow2.f32 %v796_v19 }
 0x2f0   :  { %v870_v20 = vpop.eup %869 }
 0x2f1   :  { %v798_v21 = vadd.f32 1.0, %v870_v20 }
 0x2f3   :  { %871 = vrcp.f32 %v798_v21 }
 0x300   :  { %v872_v22 = vpop.eup %871 }
 0x301   :  { %v801_v23 = vmul.f32 %v872_v22, %v870_v20 }
 0x303   :  { %v802_v24 = vsel %vm800_vm6, %v872_v22, %v801_v23 }
 0x304   :  { %803 = vst [vmem:[#allocation11] sm:$0xff] %v802_v24 }
 0x305   :  { %984 = shalt.err (!%p981_p1)
}
 0x306   :  { %813 = dma.vmem_to_hbm [thread:$0]  %s811_s8, 128, %s1098_s7, [#allocation4]  }
 0x307   :  { %999 = dma.done.wait [#allocation4], 128  }
 0x308   :  { %1000 = vsyncadd [#allocation4], 4294967168 }
 0x309   :  { %817 = vsyncpa [#allocation3], 1 }
 0x30a   :  { %818 = vsyncpa [#allocation6], 1 }
 0x30b   :  { %819 = vsyncpa [#allocation9], 1 }
 0x30c   :  { %820 = vsyncpa [#allocation4], 1 }

// kernel: tpu_custom_call.1
= control target key start
LH: loop header
LB: loop body
LE: loop exit
PB: predicated region body
PF: predicated region fallthrough
CT: control target
= control target key end

     0   :  { %12 = vsyncpa [#allocation3], 0  ;;  %s1091_s0 = inlined_call_operand.hbm [shape: f32[8,256], index: 0, kind: input, shape index: {}]   ;;  %s1092_s1 = inlined_call_operand.hbm [shape: f32[256,512], index: 1, kind: input, shape index: {}]   ;;  %s1093_s2 = inlined_call_operand.hbm [shape: f32[1,512], index: 2, kind: input, shape index: {}]   ;;  %s1094_s3 = inlined_call_operand.hbm [shape: f32[512,256], index: 3, kind: input, shape index: {}]   ;;  %s1095_s4 = inlined_call_operand.vmem [shape: f32[1,256], index: 4, kind: input, shape index: {}]   ;;  %s1096_s5 = inlined_call_operand.hbm [shape: f32[256,128], index: 5, kind: input, shape index: {}]   ;;  %s1097_s6 = inlined_call_operand.vmem [shape: f32[1,128], index: 6, kind: input, shape index: {}]   ;;  %s1098_s7 = inlined_call_operand.hbm [shape: f32[8,128], index: 7, kind: output, shape index: {}]  }
   0x1   :  { %13 = vsyncpa [#allocation6], 0 }
   0x2   :  { %14 = vsyncpa [#allocation9], 0 }
   0x3   :  { %15 = vsyncpa [#allocation4], 0  ;;  %s1001_s24 = smov [#allocation5]  }
   0x4   :  { %s31_s25 = sshll.u32 %s1001_s24, 4  ;;  %s32_s25 = int_to_ptr.vmem [resolvable:$true] %s31_s25 }
   0x5   :  { %s881_s26 = scalar_lea.vmem %s32_s25, 16384  ;;  %p886_p1 = scmp.lt.s32.totalorder %s32_s25, %s32_s25 }
   0x6   :  { %p882_p0 = scmp.ne.s32.totalorder %s32_s25, %s881_s26  ;;  %p887_p2 = scmp.lt.s32.totalorder %s881_s26, %s881_s26 }
   0x8   :  { %p888_p3 = por %p887_p2, %p886_p1 }
   0xa   :  { %p889_p4 = pnand %p888_p3, %p882_p0 }
   0xc   :  { %892 = shalt.err (!%p889_p4)
}
   0xd   :  { %s1002_s27 = smov 512   ;;  %s1003_s28 = smov 32  }
   0xe   :  { %37 = dma.hbm_to_vmem [thread:$0]  %s1092_s1, 16384, %s32_s25, [#allocation6], %s1002_s27, %s1002_s27, %s1003_s28  }
   0xf   :  { %s1004_s8 = smov [#allocation8]  }
  0x10   :  { %s53_s9 = sshll.u32 %s1004_s8, 4  ;;  %s54_s9 = int_to_ptr.vmem [resolvable:$true] %s53_s9 }
  0x11   :  { %s901_s10 = scalar_lea.vmem %s54_s9, 16384  ;;  %p906_p6 = scmp.lt.s32.totalorder %s54_s9, %s54_s9 }
  0x12   :  { %p902_p5 = scmp.ne.s32.totalorder %s54_s9, %s901_s10  ;;  %p907_p7 = scmp.lt.s32.totalorder %s901_s10, %s901_s10 }
  0x14   :  { %p908_p8 = por %p907_p7, %p906_p6 }
  0x16   :  { %p909_p9 = pnand %p908_p8, %p902_p5 }
  0x18   :  { %912 = shalt.err (!%p909_p9)
}
  0x19   :  { %s1005_s11 = smov 256   ;;  %s1006_s12 = smov 16  }
  0x1a   :  { %59 = dma.hbm_to_vmem [thread:$0]  %s1094_s3, 16384, %s54_s9, [#allocation9], %s1005_s11, %s1005_s11, %s1006_s12  }
  0x1b   :  { %s1007_s15 = smov [#allocation2]   ;;  %s1008_s17 = smov [#allocation7]  }
  0x1c   :  { %s22_s16 = sshll.u32 %s1007_s15, 4  ;;  %s44_s1 = sshll.u32 %s1008_s17, 4  ;;  %s23_s16 = int_to_ptr.vmem [resolvable:$true] %s22_s16  ;;  %s45_s1 = int_to_ptr.vmem [resolvable:$true] %s44_s1 }
  0x1d   :  { %s921_s18 = scalar_lea.vmem %s23_s16, 256  ;;  %p926_p11 = scmp.lt.s32.totalorder %s23_s16, %s23_s16 }
  0x1e   :  { %p922_p10 = scmp.ne.s32.totalorder %s23_s16, %s921_s18  ;;  %p927_p12 = scmp.lt.s32.totalorder %s921_s18, %s921_s18 }
  0x20   :  { %p928_p13 = por %p927_p12, %p926_p11 }
  0x22   :  { %p929_p0 = pnand %p928_p13, %p922_p10 }
  0x24   :  { %932 = shalt.err (!%p929_p0)
}
  0x25   :  { %25 = dma.hbm_to_vmem [thread:$0]  %s1091_s0, 256, %s23_s16, [#allocation3]  }
  0x26   :  { %s941_s21 = scalar_lea.vmem %s45_s1, 64  ;;  %p946_p2 = scmp.lt.s32.totalorder %s45_s1, %s45_s1 }
  0x27   :  { %p942_p1 = scmp.ne.s32.totalorder %s45_s1, %s941_s21  ;;  %p947_p3 = scmp.lt.s32.totalorder %s941_s21, %s941_s21 }
  0x29   :  { %p948_p4 = por %p947_p3, %p946_p2 }
  0x2b   :  { %p949_p5 = pnand %p948_p4, %p942_p1 }
  0x2d   :  { %952 = shalt.err (!%p949_p5)
}
  0x2e   :  { %47 = dma.hbm_to_vmem [thread:$0]  %s1093_s2, 64, %s45_s1, [#allocation6]  }
  0x2f   :  { %s1009_s23 = smov [#allocation10]  }
  0x30   :  { %s67_s24 = sshll.u32 %s1009_s23, 4  ;;  %s68_s24 = int_to_ptr.vmem [resolvable:$true] %s67_s24 }
  0x31   :  { %s961_s25 = scalar_lea.vmem %s68_s24, 4096  ;;  %p966_p7 = scmp.lt.s32.totalorder %s68_s24, %s68_s24 }
  0x32   :  { %p962_p6 = scmp.ne.s32.totalorder %s68_s24, %s961_s25  ;;  %p967_p8 = scmp.lt.s32.totalorder %s961_s25, %s961_s25 }
  0x34   :  { %p968_p9 = por %p967_p8, %p966_p7 }
  0x36   :  { %p969_p10 = pnand %p968_p9, %p962_p6 }
  0x38   :  { %972 = shalt.err (!%p969_p10)
}
  0x39   :  { %s1010_s0 = smov 128   ;;  %s1011_s26 = smov 8  }
  0x3a   :  { %73 = dma.hbm_to_vmem [thread:$0]  %s1096_s5, 4096, %s68_s24, [#allocation9], %s1010_s0, %s1010_s0, %s1011_s26  }
  0x3b   :  { %993 = dma.done.wait [#allocation3], 256  }
  0x3c   :  { %994 = vsyncadd [#allocation3], 4294967040 }
  0x3d   :  { %995 = dma.done.wait [#allocation6], 16448  }
  0x3e   :  { %996 = vsyncadd [#allocation6], 4294950848 }
  0x3f   :  { %997 = dma.done.wait [#allocation9], 20480  }
  0x40   :  { %998 = vsyncadd [#allocation9], 4294946816  ;;  %v154_v0 = vld [vmem:[#allocation5 + $0x1e8] sm:$0xff]  ;;  %v156_v1 = vld [vmem:[#allocation5 + $0x1f8] sm:$0xff]  ;;  %s1012_s30 = smov [#allocation11]  }
  0x41   :  { %v153_v2 = vld [vmem:[#allocation5 + $0x1e0] sm:$0xff]  ;;  %243 = vmatprep.subr.mxu0 %v154_v0  ;;  %314 = vmatprep.subr.mxu1 %v156_v1  ;;  %v155_v3 = vld [vmem:[#allocation5 + $0x1f0] sm:$0xff]  ;;  %v150_v4 = vld [vmem:[#allocation5 + $0x1c8] sm:$0xff]  ;;  %s810_s8 = sshll.u32 %s1012_s30, 4  ;;  %s811_s8 = int_to_ptr.vmem [resolvable:$true] %s810_s8 }
  0x42   :  { %v152_v5 = vld [vmem:[#allocation5 + $0x1d8] sm:$0xff]  ;;  %244 = vmatpush1.msra.mxu0 %v153_v2  ;;  %315 = vmatpush1.msra.mxu1 %v155_v3  ;;  %v149_v6 = vld [vmem:[#allocation5 + $0x1c0] sm:$0xff]  ;;  %v151_v7 = vld [vmem:[#allocation5 + $0x1d0] sm:$0xff]  ;;  %s973_s9 = scalar_lea.vmem %s811_s8, 128  ;;  %p978_p12 = scmp.lt.s32.totalorder %s811_s8, %s811_s8 }
  0x43   :  { %v146_v8 = vld [vmem:[#allocation5 + $0x1a8] sm:$0xff]  ;;  %245 = vmatprep.subr.mxu0 %v150_v4  ;;  %316 = vmatprep.subr.mxu1 %v152_v5  ;;  %v148_v9 = vld [vmem:[#allocation5 + $0x1b8] sm:$0xff]  ;;  %v145_v10 = vld [vmem:[#allocation5 + $0x1a0] sm:$0xff]  ;;  %p974_p11 = scmp.ne.s32.totalorder %s811_s8, %s973_s9  ;;  %p979_p13 = scmp.lt.s32.totalorder %s973_s9, %s973_s9 }
  0x44   :  { %v147_v11 = vld [vmem:[#allocation5 + $0x1b0] sm:$0xff]  ;;  %246 = vmatpush1.msra.mxu0 %v149_v6  ;;  %317 = vmatpush1.msra.mxu1 %v151_v7  ;;  %v142_v12 = vld [vmem:[#allocation5 + $0x188] sm:$0xff]  ;;  %v144_v13 = vld [vmem:[#allocation5 + $0x198] sm:$0xff] }
  0x45   :  { %247 = vmatprep.subr.mxu0 %v146_v8  ;;  %318 = vmatprep.subr.mxu1 %v148_v9  ;;  %v141_v14 = vld [vmem:[#allocation5 + $0x180] sm:$0xff]  ;;  %v143_v15 = vld [vmem:[#allocation5 + $0x190] sm:$0xff]  ;;  %v138_v16 = vld [vmem:[#allocation5 + $0x168] sm:$0xff]  ;;  %p980_p0 = por %p979_p13, %p978_p12 }
  0x46   :  { %248 = vmatpush1.msra.mxu0 %v145_v10  ;;  %319 = vmatpush1.msra.mxu1 %v147_v11  ;;  %v140_v17 = vld [vmem:[#allocation5 + $0x178] sm:$0xff]  ;;  %v137_v18 = vld [vmem:[#allocation5 + $0x160] sm:$0xff]  ;;  %v139_v19 = vld [vmem:[#allocation5 + $0x170] sm:$0xff] }
  0x47   :  { %249 = vmatprep.subr.mxu0 %v142_v12  ;;  %320 = vmatprep.subr.mxu1 %v144_v13  ;;  %v134_v20 = vld [vmem:[#allocation5 + $0x148] sm:$0xff]  ;;  %v136_v21 = vld [vmem:[#allocation5 + $0x158] sm:$0xff]  ;;  %v133_v22 = vld [vmem:[#allocation5 + $0x140] sm:$0xff]  ;;  %p981_p1 = pnand %p980_p0, %p974_p11 }
  0x48   :  { %250 = vmatpush1.msra.mxu0 %v141_v14  ;;  %321 = vmatpush1.msra.mxu1 %v143_v15  ;;  %v135_v23 = vld [vmem:[#allocation5 + $0x150] sm:$0xff]  ;;  %v130_v24 = vld [vmem:[#allocation5 + $0x128] sm:$0xff]  ;;  %v132_v25 = vld [vmem:[#allocation5 + $0x138] sm:$0xff] }
  0x49   :  { %251 = vmatprep.subr.mxu0 %v138_v16  ;;  %322 = vmatprep.subr.mxu1 %v140_v17  ;;  %v129_v26 = vld [vmem:[#allocation5 + $0x120] sm:$0xff]  ;;  %v131_v27 = vld [vmem:[#allocation5 + $0x130] sm:$0xff]  ;;  %v126_v28 = vld [vmem:[#allocation5 + $0x108] sm:$0xff] }
  0x4a   :  { %252 = vmatpush1.msra.mxu0 %v137_v18  ;;  %323 = vmatpush1.msra.mxu1 %v139_v19  ;;  %v128_v29 = vld [vmem:[#allocation5 + $0x118] sm:$0xff]  ;;  %v125_v30 = vld [vmem:[#allocation5 + $0x100] sm:$0xff]  ;;  %v127_v31 = vld [vmem:[#allocation5 + $0x110] sm:$0xff] }
  0x4b   :  { %253 = vmatprep.subr.mxu0 %v134_v20  ;;  %324 = vmatprep.subr.mxu1 %v136_v21  ;;  %v122_v32 = vld [vmem:[#allocation5 + $0xe8] sm:$0xff]  ;;  %v124_v33 = vld [vmem:[#allocation5 + $0xf8] sm:$0xff]  ;;  %v121_v34 = vld [vmem:[#allocation5 + $0xe0] sm:$0xff] }
  0x4c   :  { %254 = vmatpush1.msra.mxu0 %v133_v22  ;;  %325 = vmatpush1.msra.mxu1 %v135_v23  ;;  %v123_v35 = vld [vmem:[#allocation5 + $0xf0] sm:$0xff]  ;;  %v118_v36 = vld [vmem:[#allocation5 + $0xc8] sm:$0xff]  ;;  %v120_v37 = vld [vmem:[#allocation5 + $0xd8] sm:$0xff] }
  0x4d   :  { %255 = vmatprep.subr.mxu0 %v130_v24  ;;  %326 = vmatprep.subr.mxu1 %v132_v25  ;;  %v117_v38 = vld [vmem:[#allocation5 + $0xc0] sm:$0xff]  ;;  %v119_v39 = vld [vmem:[#allocation5 + $0xd0] sm:$0xff]  ;;  %v114_v40 = vld [vmem:[#allocation5 + $0xa8] sm:$0xff] }
  0x4e   :  { %256 = vmatpush1.msra.mxu0 %v129_v26  ;;  %327 = vmatpush1.msra.mxu1 %v131_v27  ;;  %v116_v41 = vld [vmem:[#allocation5 + $0xb8] sm:$0xff]  ;;  %v113_v42 = vld [vmem:[#allocation5 + $0xa0] sm:$0xff]  ;;  %v115_v43 = vld [vmem:[#allocation5 + $0xb0] sm:$0xff] }
  0x4f   :  { %257 = vmatprep.subr.mxu0 %v126_v28  ;;  %328 = vmatprep.subr.mxu1 %v128_v29  ;;  %v110_v44 = vld [vmem:[#allocation5 + $0x88] sm:$0xff]  ;;  %v112_v45 = vld [vmem:[#allocation5 + $0x98] sm:$0xff]  ;;  %v109_v46 = vld [vmem:[#allocation5 + $0x80] sm:$0xff] }
  0x50   :  { %258 = vmatpush1.msra.mxu0 %v125_v30  ;;  %329 = vmatpush1.msra.mxu1 %v127_v31  ;;  %v111_v47 = vld [vmem:[#allocation5 + $0x90] sm:$0xff]  ;;  %v106_v48 = vld [vmem:[#allocation5 + $0x68] sm:$0xff]  ;;  %v108_v49 = vld [vmem:[#allocation5 + $0x78] sm:$0xff] }
  0x51   :  { %259 = vmatprep.subr.mxu0 %v122_v32  ;;  %330 = vmatprep.subr.mxu1 %v124_v33  ;;  %v105_v50 = vld [vmem:[#allocation5 + $0x60] sm:$0xff]  ;;  %v107_v51 = vld [vmem:[#allocation5 + $0x70] sm:$0xff]  ;;  %v102_v52 = vld [vmem:[#allocation5 + $0x48] sm:$0xff] }
  0x52   :  { %260 = vmatpush1.msra.mxu0 %v121_v34  ;;  %331 = vmatpush1.msra.mxu1 %v123_v35  ;;  %v104_v53 = vld [vmem:[#allocation5 + $0x58] sm:$0xff]  ;;  %v101_v54 = vld [vmem:[#allocation5 + $0x40] sm:$0xff]  ;;  %v103_v55 = vld [vmem:[#allocation5 + $0x50] sm:$0xff] }
  0x53   :  { %261 = vmatprep.subr.mxu0 %v118_v36  ;;  %332 = vmatprep.subr.mxu1 %v120_v37  ;;  %v98_v56 = vld [vmem:[#allocation5 + $0x28] sm:$0xff]  ;;  %v100_v57 = vld [vmem:[#allocation5 + $0x38] sm:$0xff]  ;;  %v97_v58 = vld [vmem:[#allocation5 + $0x20] sm:$0xff] }
  0x54   :  { %262 = vmatpush1.msra.mxu0 %v117_v38  ;;  %333 = vmatpush1.msra.mxu1 %v119_v39  ;;  %v99_v59 = vld [vmem:[#allocation5 + $0x30] sm:$0xff]  ;;  %v94_v60 = vld [vmem:[#allocation5 + $0x8] sm:$0xff]  ;;  %v96_v61 = vld [vmem:[#allocation5 + $0x18] sm:$0xff] }
  0x55   :  { %263 = vmatprep.subr.mxu0 %v114_v40  ;;  %334 = vmatprep.subr.mxu1 %v116_v41  ;;  %v93_v62 = vld [vmem:[#allocation5] sm:$0xff]  ;;  %v95_v63 = vld [vmem:[#allocation5 + $0x10] sm:$0xff]  ;;  %v218_v0 = vld [vmem:[#allocation5 + $0x3e8] sm:$0xff] }
  0x56   :  { %264 = vmatpush1.msra.mxu0 %v113_v42  ;;  %335 = vmatpush1.msra.mxu1 %v115_v43  ;;  %v220_v1 = vld [vmem:[#allocation5 + $0x3f8] sm:$0xff]  ;;  %v217_v2 = vld [vmem:[#allocation5 + $0x3e0] sm:$0xff]  ;;  %v219_v3 = vld [vmem:[#allocation5 + $0x3f0] sm:$0xff] }
  0x57   :  { %265 = vmatprep.subr.mxu0 %v110_v44  ;;  %336 = vmatprep.subr.mxu1 %v112_v45  ;;  %v214_v4 = vld [vmem:[#allocation5 + $0x3c8] sm:$0xff]  ;;  %v216_v5 = vld [vmem:[#allocation5 + $0x3d8] sm:$0xff]  ;;  %v213_v6 = vld [vmem:[#allocation5 + $0x3c0] sm:$0xff] }
  0x58   :  { %266 = vmatpush1.msra.mxu0 %v109_v46  ;;  %337 = vmatpush1.msra.mxu1 %v111_v47  ;;  %v215_v7 = vld [vmem:[#allocation5 + $0x3d0] sm:$0xff]  ;;  %v210_v8 = vld [vmem:[#allocation5 + $0x3a8] sm:$0xff]  ;;  %v212_v9 = vld [vmem:[#allocation5 + $0x3b8] sm:$0xff] }
  0x59   :  { %267 = vmatprep.subr.mxu0 %v106_v48  ;;  %338 = vmatprep.subr.mxu1 %v108_v49  ;;  %v209_v10 = vld [vmem:[#allocation5 + $0x3a0] sm:$0xff]  ;;  %v211_v11 = vld [vmem:[#allocation5 + $0x3b0] sm:$0xff]  ;;  %v206_v12 = vld [vmem:[#allocation5 + $0x388] sm:$0xff] }
  0x5a   :  { %268 = vmatpush1.msra.mxu0 %v105_v50  ;;  %339 = vmatpush1.msra.mxu1 %v107_v51  ;;  %v208_v13 = vld [vmem:[#allocation5 + $0x398] sm:$0xff]  ;;  %v205_v14 = vld [vmem:[#allocation5 + $0x380] sm:$0xff]  ;;  %v207_v15 = vld [vmem:[#allocation5 + $0x390] sm:$0xff] }
  0x5b   :  { %269 = vmatprep.subr.mxu0 %v102_v52  ;;  %340 = vmatprep.subr.mxu1 %v104_v53  ;;  %v202_v16 = vld [vmem:[#allocation5 + $0x368] sm:$0xff]  ;;  %v204_v17 = vld [vmem:[#allocation5 + $0x378] sm:$0xff]  ;;  %v201_v18 = vld [vmem:[#allocation5 + $0x360] sm:$0xff] }
  0x5c   :  { %270 = vmatpush1.msra.mxu0 %v101_v54  ;;  %341 = vmatpush1.msra.mxu1 %v103_v55  ;;  %v203_v19 = vld [vmem:[#allocation5 + $0x370] sm:$0xff]  ;;  %v198_v20 = vld [vmem:[#allocation5 + $0x348] sm:$0xff]  ;;  %v200_v21 = vld [vmem:[#allocation5 + $0x358] sm:$0xff] }
  0x5d   :  { %271 = vmatprep.subr.mxu0 %v98_v56  ;;  %342 = vmatprep.subr.mxu1 %v100_v57  ;;  %v197_v22 = vld [vmem:[#allocation5 + $0x340] sm:$0xff]  ;;  %v199_v23 = vld [vmem:[#allocation5 + $0x350] sm:$0xff]  ;;  %v194_v24 = vld [vmem:[#allocation5 + $0x328] sm:$0xff] }
  0x5e   :  { %272 = vmatpush1.msra.mxu0 %v97_v58  ;;  %343 = vmatpush1.msra.mxu1 %v99_v59  ;;  %v196_v25 = vld [vmem:[#allocation5 + $0x338] sm:$0xff]  ;;  %v193_v26 = vld [vmem:[#allocation5 + $0x320] sm:$0xff]  ;;  %v195_v27 = vld [vmem:[#allocation5 + $0x330] sm:$0xff] }
  0x5f   :  { %273 = vmatprep.subr.mxu0 %v94_v60  ;;  %344 = vmatprep.subr.mxu1 %v96_v61  ;;  %v190_v28 = vld [vmem:[#allocation5 + $0x308] sm:$0xff]  ;;  %v192_v29 = vld [vmem:[#allocation5 + $0x318] sm:$0xff]  ;;  %v189_v30 = vld [vmem:[#allocation5 + $0x300] sm:$0xff] }
  0x60   :  { %274 = vmatpush1.msra.mxu0 %v93_v62  ;;  %345 = vmatpush1.msra.mxu1 %v95_v63  ;;  %v191_v31 = vld [vmem:[#allocation5 + $0x310] sm:$0xff]  ;;  %v186_v32 = vld [vmem:[#allocation5 + $0x2e8] sm:$0xff]  ;;  %v188_v33 = vld [vmem:[#allocation5 + $0x2f8] sm:$0xff] }
  0x61   :  { %275 = vmatprep.subr.mxu0 %v218_v0  ;;  %346 = vmatprep.subr.mxu1 %v220_v1  ;;  %v185_v34 = vld [vmem:[#allocation5 + $0x2e0] sm:$0xff]  ;;  %v187_v35 = vld [vmem:[#allocation5 + $0x2f0] sm:$0xff]  ;;  %v182_v36 = vld [vmem:[#allocation5 + $0x2c8] sm:$0xff] }
  0x62   :  { %276 = vmatpush2.msra.mxu0 %v217_v2  ;;  %347 = vmatpush2.msra.mxu1 %v219_v3  ;;  %v184_v37 = vld [vmem:[#allocation5 + $0x2d8] sm:$0xff]  ;;  %v181_v38 = vld [vmem:[#allocation5 + $0x2c0] sm:$0xff]  ;;  %v183_v39 = vld [vmem:[#allocation5 + $0x2d0] sm:$0xff] }
  0x63   :  { %277 = vmatprep.subr.mxu0 %v214_v4  ;;  %348 = vmatprep.subr.mxu1 %v216_v5  ;;  %v178_v40 = vld [vmem:[#allocation5 + $0x2a8] sm:$0xff]  ;;  %v180_v41 = vld [vmem:[#allocation5 + $0x2b8] sm:$0xff]  ;;  %v177_v42 = vld [vmem:[#allocation5 + $0x2a0] sm:$0xff] }
  0x64   :  { %278 = vmatpush2.msra.mxu0 %v213_v6  ;;  %349 = vmatpush2.msra.mxu1 %v215_v7  ;;  %v179_v43 = vld [vmem:[#allocation5 + $0x2b0] sm:$0xff]  ;;  %v174_v44 = vld [vmem:[#allocation5 + $0x288] sm:$0xff]  ;;  %v176_v45 = vld [vmem:[#allocation5 + $0x298] sm:$0xff] }
  0x65   :  { %279 = vmatprep.subr.mxu0 %v210_v8  ;;  %350 = vmatprep.subr.mxu1 %v212_v9  ;;  %v173_v46 = vld [vmem:[#allocation5 + $0x280] sm:$0xff]  ;;  %v175_v47 = vld [vmem:[#allocation5 + $0x290] sm:$0xff]  ;;  %v170_v48 = vld [vmem:[#allocation5 + $0x268] sm:$0xff] }
  0x66   :  { %280 = vmatpush2.msra.mxu0 %v209_v10  ;;  %351 = vmatpush2.msra.mxu1 %v211_v11  ;;  %v172_v49 = vld [vmem:[#allocation5 + $0x278] sm:$0xff]  ;;  %v169_v50 = vld [vmem:[#allocation5 + $0x260] sm:$0xff]  ;;  %v171_v51 = vld [vmem:[#allocation5 + $0x270] sm:$0xff] }
  0x67   :  { %281 = vmatprep.subr.mxu0 %v206_v12  ;;  %352 = vmatprep.subr.mxu1 %v208_v13  ;;  %v166_v52 = vld [vmem:[#allocation5 + $0x248] sm:$0xff]  ;;  %v168_v53 = vld [vmem:[#allocation5 + $0x258] sm:$0xff]  ;;  %v165_v54 = vld [vmem:[#allocation5 + $0x240] sm:$0xff] }
  0x68   :  { %282 = vmatpush2.msra.mxu0 %v205_v14  ;;  %353 = vmatpush2.msra.mxu1 %v207_v15  ;;  %v167_v55 = vld [vmem:[#allocation5 + $0x250] sm:$0xff]  ;;  %v162_v56 = vld [vmem:[#allocation5 + $0x228] sm:$0xff]  ;;  %v164_v57 = vld [vmem:[#allocation5 + $0x238] sm:$0xff] }
  0x69   :  { %283 = vmatprep.subr.mxu0 %v202_v16  ;;  %354 = vmatprep.subr.mxu1 %v204_v17  ;;  %v161_v58 = vld [vmem:[#allocation5 + $0x220] sm:$0xff]  ;;  %v163_v59 = vld [vmem:[#allocation5 + $0x230] sm:$0xff]  ;;  %v158_v60 = vld [vmem:[#allocation5 + $0x208] sm:$0xff] }
  0x6a   :  { %284 = vmatpush2.msra.mxu0 %v201_v18  ;;  %355 = vmatpush2.msra.mxu1 %v203_v19  ;;  %v160_v61 = vld [vmem:[#allocation5 + $0x218] sm:$0xff]  ;;  %v157_v62 = vld [vmem:[#allocation5 + $0x200] sm:$0xff]  ;;  %v159_v0 = vld [vmem:[#allocation5 + $0x210] sm:$0xff] }
  0x6b   :  { %285 = vmatprep.subr.mxu0 %v198_v20  ;;  %356 = vmatprep.subr.mxu1 %v200_v21  ;;  %v92_v63 = vld [vmem:[#allocation2 + $0x8] sm:$0xff]  ;;  %v91_v1 = vld [vmem:[#allocation2] sm:$0xff]  ;;  %v425_v8 = vld [vmem:[#allocation8 + $0xe0] sm:$0xff] }
  0x6c   :  { %286 = vmatpush2.msra.mxu0 %v197_v22  ;;  %357 = vmatpush2.msra.mxu1 %v199_v23  ;;  %v428_v2 = vld [vmem:[#allocation8 + $0xf8] sm:$0xff]  ;;  %v427_v4 = vld [vmem:[#allocation8 + $0xf0] sm:$0xff]  ;;  %v426_v6 = vld [vmem:[#allocation8 + $0xe8] sm:$0xff] }
  0x6d   :  { %287 = vmatprep.subr.mxu0 %v194_v24  ;;  %358 = vmatprep.subr.mxu1 %v196_v25  ;;  %v492_v3 = vld [vmem:[#allocation8 + $0x2f8] sm:$0xff]  ;;  %v491_v5 = vld [vmem:[#allocation8 + $0x2f0] sm:$0xff]  ;;  %v490_v7 = vld [vmem:[#allocation8 + $0x2e8] sm:$0xff] }
  0x6e   :  { %288 = vmatpush2.msra.mxu0 %v193_v26  ;;  %359 = vmatpush2.msra.mxu1 %v195_v27  ;;  %v489_v9 = vld [vmem:[#allocation8 + $0x2e0] sm:$0xff]  ;;  %v424_v10 = vld [vmem:[#allocation8 + $0xd8] sm:$0xff]  ;;  %v423_v12 = vld [vmem:[#allocation8 + $0xd0] sm:$0xff] }
  0x6f   :  { %289 = vmatprep.subr.mxu0 %v190_v28  ;;  %360 = vmatprep.subr.mxu1 %v192_v29  ;;  %v488_v11 = vld [vmem:[#allocation8 + $0x2d8] sm:$0xff]  ;;  %v487_v13 = vld [vmem:[#allocation8 + $0x2d0] sm:$0xff]  ;;  %v422_v14 = vld [vmem:[#allocation8 + $0xc8] sm:$0xff] }
  0x70   :  { %290 = vmatpush2.msra.mxu0 %v189_v30  ;;  %361 = vmatpush2.msra.mxu1 %v191_v31  ;;  %v486_v15 = vld [vmem:[#allocation8 + $0x2c8] sm:$0xff]  ;;  %v421_v16 = vld [vmem:[#allocation8 + $0xc0] sm:$0xff]  ;;  %v420_v18 = vld [vmem:[#allocation8 + $0xb8] sm:$0xff] }
  0x71   :  { %291 = vmatprep.subr.mxu0 %v186_v32  ;;  %362 = vmatprep.subr.mxu1 %v188_v33  ;;  %v485_v17 = vld [vmem:[#allocation8 + $0x2c0] sm:$0xff]  ;;  %v484_v19 = vld [vmem:[#allocation8 + $0x2b8] sm:$0xff]  ;;  %v419_v20 = vld [vmem:[#allocation8 + $0xb0] sm:$0xff] }
  0x72   :  { %292 = vmatpush2.msra.mxu0 %v185_v34  ;;  %363 = vmatpush2.msra.mxu1 %v187_v35  ;;  %v483_v21 = vld [vmem:[#allocation8 + $0x2b0] sm:$0xff]  ;;  %v418_v22 = vld [vmem:[#allocation8 + $0xa8] sm:$0xff]  ;;  %v417_v24 = vld [vmem:[#allocation8 + $0xa0] sm:$0xff] }
  0x73   :  { %293 = vmatprep.subr.mxu0 %v182_v36  ;;  %364 = vmatprep.subr.mxu1 %v184_v37  ;;  %v482_v23 = vld [vmem:[#allocation8 + $0x2a8] sm:$0xff]  ;;  %v481_v25 = vld [vmem:[#allocation8 + $0x2a0] sm:$0xff]  ;;  %v416_v26 = vld [vmem:[#allocation8 + $0x98] sm:$0xff] }
  0x74   :  { %294 = vmatpush2.msra.mxu0 %v181_v38  ;;  %365 = vmatpush2.msra.mxu1 %v183_v39  ;;  %v480_v27 = vld [vmem:[#allocation8 + $0x298] sm:$0xff]  ;;  %v415_v28 = vld [vmem:[#allocation8 + $0x90] sm:$0xff]  ;;  %v414_v30 = vld [vmem:[#allocation8 + $0x88] sm:$0xff] }
  0x75   :  { %295 = vmatprep.subr.mxu0 %v178_v40  ;;  %366 = vmatprep.subr.mxu1 %v180_v41  ;;  %v479_v29 = vld [vmem:[#allocation8 + $0x290] sm:$0xff]  ;;  %v478_v31 = vld [vmem:[#allocation8 + $0x288] sm:$0xff]  ;;  %v413_v32 = vld [vmem:[#allocation8 + $0x80] sm:$0xff] }
  0x76   :  { %296 = vmatpush2.msra.mxu0 %v177_v42  ;;  %367 = vmatpush2.msra.mxu1 %v179_v43  ;;  %v477_v33 = vld [vmem:[#allocation8 + $0x280] sm:$0xff]  ;;  %v412_v34 = vld [vmem:[#allocation8 + $0x78] sm:$0xff]  ;;  %v411_v36 = vld [vmem:[#allocation8 + $0x70] sm:$0xff] }
  0x77   :  { %297 = vmatprep.subr.mxu0 %v174_v44  ;;  %368 = vmatprep.subr.mxu1 %v176_v45  ;;  %v476_v35 = vld [vmem:[#allocation8 + $0x278] sm:$0xff]  ;;  %v475_v37 = vld [vmem:[#allocation8 + $0x270] sm:$0xff]  ;;  %v410_v38 = vld [vmem:[#allocation8 + $0x68] sm:$0xff] }
  0x78   :  { %298 = vmatpush2.msra.mxu0 %v173_v46  ;;  %369 = vmatpush2.msra.mxu1 %v175_v47  ;;  %v474_v39 = vld [vmem:[#allocation8 + $0x268] sm:$0xff]  ;;  %v409_v40 = vld [vmem:[#allocation8 + $0x60] sm:$0xff]  ;;  %v408_v42 = vld [vmem:[#allocation8 + $0x58] sm:$0xff] }
  0x79   :  { %299 = vmatprep.subr.mxu0 %v170_v48  ;;  %370 = vmatprep.subr.mxu1 %v172_v49  ;;  %v473_v41 = vld [vmem:[#allocation8 + $0x260] sm:$0xff]  ;;  %v472_v43 = vld [vmem:[#allocation8 + $0x258] sm:$0xff]  ;;  %v407_v44 = vld [vmem:[#allocation8 + $0x50] sm:$0xff] }
  0x7a   :  { %300 = vmatpush2.msra.mxu0 %v169_v50  ;;  %371 = vmatpush2.msra.mxu1 %v171_v51  ;;  %v471_v45 = vld [vmem:[#allocation8 + $0x250] sm:$0xff]  ;;  %v406_v46 = vld [vmem:[#allocation8 + $0x48] sm:$0xff]  ;;  %v405_v48 = vld [vmem:[#allocation8 + $0x40] sm:$0xff] }
  0x7b   :  { %301 = vmatprep.subr.mxu0 %v166_v52  ;;  %372 = vmatprep.subr.mxu1 %v168_v53  ;;  %v470_v47 = vld [vmem:[#allocation8 + $0x248] sm:$0xff]  ;;  %v469_v49 = vld [vmem:[#allocation8 + $0x240] sm:$0xff]  ;;  %v404_v50 = vld [vmem:[#allocation8 + $0x38] sm:$0xff] }
  0x7c   :  { %302 = vmatpush2.msra.mxu0 %v165_v54  ;;  %373 = vmatpush2.msra.mxu1 %v167_v55  ;;  %v468_v51 = vld [vmem:[#allocation8 + $0x238] sm:$0xff]  ;;  %v403_v52 = vld [vmem:[#allocation8 + $0x30] sm:$0xff]  ;;  %v402_v54 = vld [vmem:[#allocation8 + $0x28] sm:$0xff] }
  0x7d   :  { %303 = vmatprep.subr.mxu0 %v162_v56  ;;  %374 = vmatprep.subr.mxu1 %v164_v57  ;;  %v467_v53 = vld [vmem:[#allocation8 + $0x230] sm:$0xff]  ;;  %v466_v55 = vld [vmem:[#allocation8 + $0x228] sm:$0xff]  ;;  %v401_v56 = vld [vmem:[#allocation8 + $0x20] sm:$0xff] }
  0x7e   :  { %304 = vmatpush2.msra.mxu0 %v161_v58  ;;  %375 = vmatpush2.msra.mxu1 %v163_v59  ;;  %v465_v57 = vld [vmem:[#allocation8 + $0x220] sm:$0xff]  ;;  %v400_v58 = vld [vmem:[#allocation8 + $0x18] sm:$0xff] }
  0x7f   :  { %305 = vmatprep.subr.mxu0 %v158_v60  ;;  %376 = vmatprep.subr.mxu1 %v160_v61  ;;  %v464_v59 = vld [vmem:[#allocation8 + $0x218] sm:$0xff]  ;;  %v399_v60 = vld [vmem:[#allocation8 + $0x10] sm:$0xff] }
  0x80   :  { %306 = vmatpush2.msra.mxu0 %v157_v62  ;;  %307 = vmatprep.mubr.f32.mxu0 %v92_v63  ;;  %v463_v61 = vld [vmem:[#allocation8 + $0x210] sm:$0xff]  ;;  %v398_v62 = vld [vmem:[#allocation8 + $0x8] sm:$0xff] }
  0x81   :  { %377 = vmatpush2.msra.mxu1 %v159_v0  ;;  %378 = vmatprep.mubr.f32.mxu1 %v92_v63  ;;  %v462_v63 = vld [vmem:[#allocation8 + $0x208] sm:$0xff]  ;;  %v397_v0 = vld [vmem:[#allocation8] sm:$0xff] }
  0x82   :  { %308 = vmatmul.mubr.f32.vlgmr.msra.gmra.mxu0 %v91_v1  ;;  %379 = vmatmul.mubr.f32.vlgmr.msra.gmra.mxu1 %v91_v1  ;;  %v461_v1 = vld [vmem:[#allocation8 + $0x200] sm:$0xff] }
  0x83   :  { %537 = vmatprep.subr.mxu0 %v428_v2  ;;  %608 = vmatprep.subr.mxu1 %v492_v3  ;;  %v460_v2 = vld [vmem:[#allocation8 + $0x1f8] sm:$0xff] }
  0x84   :  { %538 = vmatpush1.msra.mxu0 %v427_v4  ;;  %609 = vmatpush1.msra.mxu1 %v491_v5  ;;  %v524_v3 = vld [vmem:[#allocation8 + $0x3f8] sm:$0xff]  ;;  %v459_v4 = vld [vmem:[#allocation8 + $0x1f0] sm:$0xff] }
  0x85   :  { %539 = vmatprep.subr.mxu0 %v426_v6  ;;  %610 = vmatprep.subr.mxu1 %v490_v7  ;;  %v523_v5 = vld [vmem:[#allocation8 + $0x3f0] sm:$0xff]  ;;  %v458_v6 = vld [vmem:[#allocation8 + $0x1e8] sm:$0xff] }
  0x86   :  { %540 = vmatpush1.msra.mxu0 %v425_v8  ;;  %611 = vmatpush1.msra.mxu1 %v489_v9  ;;  %v522_v7 = vld [vmem:[#allocation8 + $0x3e8] sm:$0xff]  ;;  %v457_v8 = vld [vmem:[#allocation8 + $0x1e0] sm:$0xff] }
  0x87   :  { %541 = vmatprep.subr.mxu0 %v424_v10  ;;  %612 = vmatprep.subr.mxu1 %v488_v11  ;;  %v521_v9 = vld [vmem:[#allocation8 + $0x3e0] sm:$0xff]  ;;  %v456_v10 = vld [vmem:[#allocation8 + $0x1d8] sm:$0xff] }
  0x88   :  { %542 = vmatpush1.msra.mxu0 %v423_v12  ;;  %613 = vmatpush1.msra.mxu1 %v487_v13  ;;  %v520_v11 = vld [vmem:[#allocation8 + $0x3d8] sm:$0xff]  ;;  %v455_v12 = vld [vmem:[#allocation8 + $0x1d0] sm:$0xff] }
  0x89   :  { %543 = vmatprep.subr.mxu0 %v422_v14  ;;  %614 = vmatprep.subr.mxu1 %v486_v15  ;;  %v519_v13 = vld [vmem:[#allocation8 + $0x3d0] sm:$0xff]  ;;  %v454_v14 = vld [vmem:[#allocation8 + $0x1c8] sm:$0xff] }
  0x8a   :  { %544 = vmatpush1.msra.mxu0 %v421_v16  ;;  %615 = vmatpush1.msra.mxu1 %v485_v17  ;;  %v518_v15 = vld [vmem:[#allocation8 + $0x3c8] sm:$0xff]  ;;  %v453_v16 = vld [vmem:[#allocation8 + $0x1c0] sm:$0xff] }
  0x8b   :  { %545 = vmatprep.subr.mxu0 %v420_v18  ;;  %616 = vmatprep.subr.mxu1 %v484_v19  ;;  %v517_v17 = vld [vmem:[#allocation8 + $0x3c0] sm:$0xff]  ;;  %v452_v18 = vld [vmem:[#allocation8 + $0x1b8] sm:$0xff] }
  0x8c   :  { %546 = vmatpush1.msra.mxu0 %v419_v20  ;;  %617 = vmatpush1.msra.mxu1 %v483_v21  ;;  %v516_v19 = vld [vmem:[#allocation8 + $0x3b8] sm:$0xff]  ;;  %v451_v20 = vld [vmem:[#allocation8 + $0x1b0] sm:$0xff] }
  0x8d   :  { %547 = vmatprep.subr.mxu0 %v418_v22  ;;  %618 = vmatprep.subr.mxu1 %v482_v23  ;;  %v515_v21 = vld [vmem:[#allocation8 + $0x3b0] sm:$0xff]  ;;  %v450_v22 = vld [vmem:[#allocation8 + $0x1a8] sm:$0xff] }
  0x8e   :  { %548 = vmatpush1.msra.mxu0 %v417_v24  ;;  %619 = vmatpush1.msra.mxu1 %v481_v25  ;;  %v514_v23 = vld [vmem:[#allocation8 + $0x3a8] sm:$0xff]  ;;  %v449_v24 = vld [vmem:[#allocation8 + $0x1a0] sm:$0xff] }
  0x8f   :  { %549 = vmatprep.subr.mxu0 %v416_v26  ;;  %620 = vmatprep.subr.mxu1 %v480_v27  ;;  %v513_v25 = vld [vmem:[#allocation8 + $0x3a0] sm:$0xff]  ;;  %v448_v26 = vld [vmem:[#allocation8 + $0x198] sm:$0xff] }
  0x90   :  { %550 = vmatpush1.msra.mxu0 %v415_v28  ;;  %621 = vmatpush1.msra.mxu1 %v479_v29  ;;  %v512_v27 = vld [vmem:[#allocation8 + $0x398] sm:$0xff]  ;;  %v447_v28 = vld [vmem:[#allocation8 + $0x190] sm:$0xff] }
  0x91   :  { %551 = vmatprep.subr.mxu0 %v414_v30  ;;  %622 = vmatprep.subr.mxu1 %v478_v31  ;;  %v511_v29 = vld [vmem:[#allocation8 + $0x390] sm:$0xff]  ;;  %v446_v30 = vld [vmem:[#allocation8 + $0x188] sm:$0xff] }
  0x92   :  { %552 = vmatpush1.msra.mxu0 %v413_v32  ;;  %623 = vmatpush1.msra.mxu1 %v477_v33  ;;  %v510_v31 = vld [vmem:[#allocation8 + $0x388] sm:$0xff]  ;;  %v445_v32 = vld [vmem:[#allocation8 + $0x180] sm:$0xff] }
  0x93   :  { %553 = vmatprep.subr.mxu0 %v412_v34  ;;  %624 = vmatprep.subr.mxu1 %v476_v35  ;;  %v509_v33 = vld [vmem:[#allocation8 + $0x380] sm:$0xff]  ;;  %v444_v34 = vld [vmem:[#allocation8 + $0x178] sm:$0xff] }
  0x94   :  { %554 = vmatpush1.msra.mxu0 %v411_v36  ;;  %625 = vmatpush1.msra.mxu1 %v475_v37  ;;  %v508_v35 = vld [vmem:[#allocation8 + $0x378] sm:$0xff]  ;;  %v443_v36 = vld [vmem:[#allocation8 + $0x170] sm:$0xff] }
  0x95   :  { %555 = vmatprep.subr.mxu0 %v410_v38  ;;  %626 = vmatprep.subr.mxu1 %v474_v39  ;;  %v507_v37 = vld [vmem:[#allocation8 + $0x370] sm:$0xff]  ;;  %v442_v38 = vld [vmem:[#allocation8 + $0x168] sm:$0xff] }
  0x96   :  { %556 = vmatpush1.msra.mxu0 %v409_v40  ;;  %627 = vmatpush1.msra.mxu1 %v473_v41  ;;  %v506_v39 = vld [vmem:[#allocation8 + $0x368] sm:$0xff]  ;;  %v441_v40 = vld [vmem:[#allocation8 + $0x160] sm:$0xff] }
  0x97   :  { %557 = vmatprep.subr.mxu0 %v408_v42  ;;  %628 = vmatprep.subr.mxu1 %v472_v43  ;;  %v505_v41 = vld [vmem:[#allocation8 + $0x360] sm:$0xff]  ;;  %v440_v42 = vld [vmem:[#allocation8 + $0x158] sm:$0xff] }
  0x98   :  { %558 = vmatpush1.msra.mxu0 %v407_v44  ;;  %629 = vmatpush1.msra.mxu1 %v471_v45  ;;  %v504_v43 = vld [vmem:[#allocation8 + $0x358] sm:$0xff]  ;;  %v439_v44 = vld [vmem:[#allocation8 + $0x150] sm:$0xff] }
  0x99   :  { %559 = vmatprep.subr.mxu0 %v406_v46  ;;  %630 = vmatprep.subr.mxu1 %v470_v47  ;;  %v503_v45 = vld [vmem:[#allocation8 + $0x350] sm:$0xff]  ;;  %v438_v46 = vld [vmem:[#allocation8 + $0x148] sm:$0xff] }
  0x9a   :  { %560 = vmatpush1.msra.mxu0 %v405_v48  ;;  %631 = vmatpush1.msra.mxu1 %v469_v49  ;;  %v502_v47 = vld [vmem:[#allocation8 + $0x348] sm:$0xff]  ;;  %v437_v48 = vld [vmem:[#allocation8 + $0x140] sm:$0xff] }
  0x9b   :  { %561 = vmatprep.subr.mxu0 %v404_v50  ;;  %632 = vmatprep.subr.mxu1 %v468_v51  ;;  %v501_v49 = vld [vmem:[#allocation8 + $0x340] sm:$0xff]  ;;  %v436_v50 = vld [vmem:[#allocation8 + $0x138] sm:$0xff] }
  0x9c   :  { %562 = vmatpush1.msra.mxu0 %v403_v52  ;;  %633 = vmatpush1.msra.mxu1 %v467_v53  ;;  %v500_v51 = vld [vmem:[#allocation8 + $0x338] sm:$0xff]  ;;  %v435_v52 = vld [vmem:[#allocation8 + $0x130] sm:$0xff] }
  0x9d   :  { %563 = vmatprep.subr.mxu0 %v402_v54  ;;  %634 = vmatprep.subr.mxu1 %v466_v55  ;;  %v499_v53 = vld [vmem:[#allocation8 + $0x330] sm:$0xff]  ;;  %v434_v54 = vld [vmem:[#allocation8 + $0x128] sm:$0xff] }
  0x9e   :  { %564 = vmatpush1.msra.mxu0 %v401_v56  ;;  %635 = vmatpush1.msra.mxu1 %v465_v57  ;;  %v498_v55 = vld [vmem:[#allocation8 + $0x328] sm:$0xff]  ;;  %v433_v56 = vld [vmem:[#allocation8 + $0x120] sm:$0xff] }
  0x9f   :  { %565 = vmatprep.subr.mxu0 %v400_v58  ;;  %636 = vmatprep.subr.mxu1 %v464_v59  ;;  %v497_v57 = vld [vmem:[#allocation8 + $0x320] sm:$0xff]  ;;  %v432_v58 = vld [vmem:[#allocation8 + $0x118] sm:$0xff] }
  0xa0   :  { %566 = vmatpush1.msra.mxu0 %v399_v60  ;;  %637 = vmatpush1.msra.mxu1 %v463_v61  ;;  %v496_v59 = vld [vmem:[#allocation8 + $0x318] sm:$0xff]  ;;  %v431_v60 = vld [vmem:[#allocation8 + $0x110] sm:$0xff] }
  0xa1   :  { %567 = vmatprep.subr.mxu0 %v398_v62  ;;  %638 = vmatprep.subr.mxu1 %v462_v63  ;;  %v495_v61 = vld [vmem:[#allocation8 + $0x310] sm:$0xff]  ;;  %v430_v62 = vld [vmem:[#allocation8 + $0x108] sm:$0xff] }
  0xa2   :  { %568 = vmatpush1.msra.mxu0 %v397_v0  ;;  %639 = vmatpush1.msra.mxu1 %v461_v1  ;;  %v494_v63 = vld [vmem:[#allocation8 + $0x308] sm:$0xff]  ;;  %v429_v0 = vld [vmem:[#allocation8 + $0x100] sm:$0xff] }
  0xa3   :  { %569 = vmatprep.subr.mxu0 %v460_v2  ;;  %640 = vmatprep.subr.mxu1 %v524_v3  ;;  %v493_v1 = vld [vmem:[#allocation8 + $0x300] sm:$0xff]  ;;  %v716_v2 = vld [vmem:[#allocation10 + $0xf8] sm:$0xff]  ;;  %v223_v3 = vlaneseq }
  0xa4   :  { %570 = vmatpush2.msra.mxu0 %v459_v4  ;;  %641 = vmatpush2.msra.mxu1 %v523_v5 }
  0xa5   :  { %571 = vmatprep.subr.mxu0 %v458_v6  ;;  %642 = vmatprep.subr.mxu1 %v522_v7  ;;  %v1068_v4 = vshrl.u32 %v223_v3, 7  ;;  %v221_v7 = vld [vmem:[#allocation7] sm:$0xf] }
  0xa6   :  { %572 = vmatpush2.msra.mxu0 %v457_v8  ;;  %643 = vmatpush2.msra.mxu1 %v521_v9 }
  0xa7   :  { %573 = vmatprep.subr.mxu0 %v456_v10  ;;  %644 = vmatprep.subr.mxu1 %v520_v11  ;;  %v225_v5 = vsub.s32 0, %v1068_v4  ;;  %v233_v6 = vsub.s32 2, %v1068_v4  ;;  %v229_v8 = vsub.s32 1, %v1068_v4  ;;  %v237_v9 = vsub.s32 3, %v1068_v4  ;;  %v821_v4 = vld [vmem:[%s1097_s6] ss:$0 sm:$0xff] }
  0xa8   :  { %574 = vmatpush2.msra.mxu0 %v455_v12  ;;  %645 = vmatpush2.msra.mxu1 %v519_v13 }
  0xa9   :  { %575 = vmatprep.subr.mxu0 %v454_v14  ;;  %646 = vmatprep.subr.mxu1 %v518_v15  ;;  %v226_v10 = vrot.slane %v221_v7, %v225_v5  ;;  %v234_v11 = vrot.slane %v221_v7, %v233_v6  ;;  %v230_v14 = vrot.slane %v221_v7, %v229_v8 }
  0xaa   :  { %576 = vmatpush2.msra.mxu0 %v453_v16  ;;  %647 = vmatpush2.msra.mxu1 %v517_v17  ;;  %v238_v15 = vrot.slane %v221_v7, %v237_v9 }
  0xab   :  { %577 = vmatprep.subr.mxu0 %v452_v18  ;;  %648 = vmatprep.subr.mxu1 %v516_v19 }
  0xac   :  { %578 = vmatpush2.msra.mxu0 %v451_v20  ;;  %649 = vmatpush2.msra.mxu1 %v515_v21 }
  0xad   :  { %579 = vmatprep.subr.mxu0 %v450_v22  ;;  %650 = vmatprep.subr.mxu1 %v514_v23 }
  0xae   :  { %580 = vmatpush2.msra.mxu0 %v449_v24  ;;  %651 = vmatpush2.msra.mxu1 %v513_v25 }
  0xaf   :  { %581 = vmatprep.subr.mxu0 %v448_v26  ;;  %652 = vmatprep.subr.mxu1 %v512_v27 }
  0xb0   :  { %582 = vmatpush2.msra.mxu0 %v447_v28  ;;  %653 = vmatpush2.msra.mxu1 %v511_v29  ;;  %v700_v28 = vld [vmem:[#allocation10 + $0x78] sm:$0xff] }
  0xb1   :  { %583 = vmatprep.subr.mxu0 %v446_v30  ;;  %654 = vmatprep.subr.mxu1 %v510_v31  ;;  %v715_v31 = vld [vmem:[#allocation10 + $0xf0] sm:$0xff] }
  0xb2   :  { %584 = vmatpush2.msra.mxu0 %v445_v32  ;;  %655 = vmatpush2.msra.mxu1 %v509_v33  ;;  %v699_v32 = vld [vmem:[#allocation10 + $0x70] sm:$0xff]  ;;  %v714_v33 = vld [vmem:[#allocation10 + $0xe8] sm:$0xff] }
  0xb3   :  { %585 = vmatprep.subr.mxu0 %v444_v34  ;;  %656 = vmatprep.subr.mxu1 %v508_v35  ;;  %v698_v34 = vld [vmem:[#allocation10 + $0x68] sm:$0xff]  ;;  %v713_v35 = vld [vmem:[#allocation10 + $0xe0] sm:$0xff] }
  0xb4   :  { %586 = vmatpush2.msra.mxu0 %v443_v36  ;;  %657 = vmatpush2.msra.mxu1 %v507_v37  ;;  %v697_v36 = vld [vmem:[#allocation10 + $0x60] sm:$0xff]  ;;  %v712_v37 = vld [vmem:[#allocation10 + $0xd8] sm:$0xff] }
  0xb5   :  { %587 = vmatprep.subr.mxu0 %v442_v38  ;;  %658 = vmatprep.subr.mxu1 %v506_v39  ;;  %v696_v38 = vld [vmem:[#allocation10 + $0x58] sm:$0xff]  ;;  %v711_v39 = vld [vmem:[#allocation10 + $0xd0] sm:$0xff] }
  0xb6   :  { %588 = vmatpush2.msra.mxu0 %v441_v40  ;;  %659 = vmatpush2.msra.mxu1 %v505_v41  ;;  %v695_v40 = vld [vmem:[#allocation10 + $0x50] sm:$0xff]  ;;  %v710_v41 = vld [vmem:[#allocation10 + $0xc8] sm:$0xff] }
  0xb7   :  { %589 = vmatprep.subr.mxu0 %v440_v42  ;;  %660 = vmatprep.subr.mxu1 %v504_v43  ;;  %v694_v42 = vld [vmem:[#allocation10 + $0x48] sm:$0xff]  ;;  %v709_v43 = vld [vmem:[#allocation10 + $0xc0] sm:$0xff] }
  0xb8   :  { %590 = vmatpush2.msra.mxu0 %v439_v44  ;;  %661 = vmatpush2.msra.mxu1 %v503_v45  ;;  %v693_v44 = vld [vmem:[#allocation10 + $0x40] sm:$0xff]  ;;  %v708_v45 = vld [vmem:[#allocation10 + $0xb8] sm:$0xff] }
  0xb9   :  { %591 = vmatprep.subr.mxu0 %v438_v46  ;;  %662 = vmatprep.subr.mxu1 %v502_v47  ;;  %v692_v46 = vld [vmem:[#allocation10 + $0x38] sm:$0xff]  ;;  %v707_v47 = vld [vmem:[#allocation10 + $0xb0] sm:$0xff] }
  0xba   :  { %592 = vmatpush2.msra.mxu0 %v437_v48  ;;  %663 = vmatpush2.msra.mxu1 %v501_v49  ;;  %v691_v48 = vld [vmem:[#allocation10 + $0x30] sm:$0xff]  ;;  %v706_v49 = vld [vmem:[#allocation10 + $0xa8] sm:$0xff] }
  0xbb   :  { %593 = vmatprep.subr.mxu0 %v436_v50  ;;  %664 = vmatprep.subr.mxu1 %v500_v51  ;;  %v690_v50 = vld [vmem:[#allocation10 + $0x28] sm:$0xff]  ;;  %v705_v51 = vld [vmem:[#allocation10 + $0xa0] sm:$0xff] }
  0xbc   :  { %594 = vmatpush2.msra.mxu0 %v435_v52  ;;  %665 = vmatpush2.msra.mxu1 %v499_v53  ;;  %v689_v52 = vld [vmem:[#allocation10 + $0x20] sm:$0xff]  ;;  %v704_v53 = vld [vmem:[#allocation10 + $0x98] sm:$0xff] }
  0xbd   :  { %595 = vmatprep.subr.mxu0 %v434_v54  ;;  %666 = vmatprep.subr.mxu1 %v498_v55  ;;  %v688_v54 = vld [vmem:[#allocation10 + $0x18] sm:$0xff]  ;;  %v703_v55 = vld [vmem:[#allocation10 + $0x90] sm:$0xff] }
  0xbe   :  { %596 = vmatpush2.msra.mxu0 %v433_v56  ;;  %667 = vmatpush2.msra.mxu1 %v497_v57  ;;  %v687_v56 = vld [vmem:[#allocation10 + $0x10] sm:$0xff]  ;;  %v702_v57 = vld [vmem:[#allocation10 + $0x88] sm:$0xff] }
  0xbf   :  { %597 = vmatprep.subr.mxu0 %v432_v58  ;;  %668 = vmatprep.subr.mxu1 %v496_v59  ;;  %v686_v58 = vld [vmem:[#allocation10 + $0x8] sm:$0xff]  ;;  %v701_v59 = vld [vmem:[#allocation10 + $0x80] sm:$0xff] }
  0xc0   :  { %598 = vmatpush2.msra.mxu0 %v431_v60  ;;  %669 = vmatpush2.msra.mxu1 %v495_v61  ;;  %v685_v60 = vld [vmem:[#allocation10] sm:$0xff]  ;;  %v525_v61 = vld [vmem:[%s1095_s4] sm:$0x3] }
  0xc1   :  { %599 = vmatprep.subr.mxu0 %v430_v62  ;;  %670 = vmatprep.subr.mxu1 %v494_v63  ;;  %v530_v62 = vrot.slane %v525_v61, %v225_v5  ;;  %v534_v63 = vrot.slane %v525_v61, %v229_v8 }
  0xc2   :  { %600 = vmatpush2.msra.mxu0 %v429_v0  ;;  %671 = vmatpush2.msra.mxu1 %v493_v1 }
  0xc3   :  { %822 = vmatprep.subr.mxu0 %v716_v2 }
 0x142   :  { %v309_v12 = vpop.f32.mrf.mxu0  ;;  %v380_v13 = vpop.f32.mrf.mxu1 }
 0x143   :  { %v310_v16 = vadd.f32 %v309_v12, %v226_v10  ;;  %v381_v17 = vadd.f32 %v380_v13, %v234_v11 }
 0x144   :  { %v311_v18 = vpop.f32.mrf.mxu0  ;;  %v382_v19 = vpop.f32.mrf.mxu1 }
 0x145   :  { %v312_v20 = vadd.f32 %v311_v18, %v230_v14  ;;  %v383_v21 = vadd.f32 %v382_v19, %v238_v15  ;;  %vm385_vm0 = vcmp.gt.f32.partialorder %v310_v16, 0.0  ;;  %v389_v22 = vmul.f32 0.2, %v310_v16 }
 0x146   :  { %vm387_vm1 = vcmp.gt.f32.partialorder %v381_v17, 0.0  ;;  %v391_v23 = vmul.f32 0.2, %v381_v17 }
 0x147   :  { %v390_v24 = vmul.f32 0.2, %v312_v20  ;;  %v392_v25 = vmul.f32 0.2, %v383_v21  ;;  %vm386_vm2 = vcmp.gt.f32.partialorder %v312_v20, 0.0  ;;  %vm388_vm3 = vcmp.gt.f32.partialorder %v383_v21, 0.0 }
 0x148   :  { %v393_v29 = vsel %vm385_vm0, %v310_v16, %v389_v22  ;;  %v395_v30 = vsel %vm387_vm1, %v381_v17, %v391_v23 }
 0x149   :  { %v394_v26 = vsel %vm386_vm2, %v312_v20, %v390_v24  ;;  %v396_v27 = vsel %vm388_vm3, %v383_v21, %v392_v25 }
 0x14a   :  { %601 = vmatprep.mubr.f32.mxu0 %v394_v26  ;;  %672 = vmatprep.mubr.f32.mxu1 %v396_v27 }
 0x14b   :  { %602 = vmatmul.mubr.f32.vlgmr.msra.gmra.mxu0 %v393_v29  ;;  %673 = vmatmul.mubr.f32.vlgmr.msra.gmra.mxu1 %v395_v30 }
 0x14c   :  { %823 = vmatpush3.msra.mxu0 %v700_v28 }
 0x14d   :  { %824 = vmatprep.subr.mxu0 %v715_v31 }
 0x14e   :  { %825 = vmatpush3.msra.mxu0 %v699_v32 }
 0x14f   :  { %826 = vmatprep.subr.mxu0 %v714_v33 }
 0x150   :  { %827 = vmatpush3.msra.mxu0 %v698_v34 }
 0x151   :  { %828 = vmatprep.subr.mxu0 %v713_v35 }
 0x152   :  { %829 = vmatpush3.msra.mxu0 %v697_v36 }
 0x153   :  { %830 = vmatprep.subr.mxu0 %v712_v37 }
 0x154   :  { %831 = vmatpush3.msra.mxu0 %v696_v38 }
 0x155   :  { %832 = vmatprep.subr.mxu0 %v711_v39 }
 0x156   :  { %833 = vmatpush3.msra.mxu0 %v695_v40 }
 0x157   :  { %834 = vmatprep.subr.mxu0 %v710_v41 }
 0x158   :  { %835 = vmatpush3.msra.mxu0 %v694_v42 }
 0x159   :  { %836 = vmatprep.subr.mxu0 %v709_v43 }
 0x15a   :  { %837 = vmatpush3.msra.mxu0 %v693_v44 }
 0x15b   :  { %838 = vmatprep.subr.mxu0 %v708_v45 }
 0x15c   :  { %839 = vmatpush3.msra.mxu0 %v692_v46 }
 0x15d   :  { %840 = vmatprep.subr.mxu0 %v707_v47 }
 0x15e   :  { %841 = vmatpush3.msra.mxu0 %v691_v48 }
 0x15f   :  { %842 = vmatprep.subr.mxu0 %v706_v49 }
 0x160   :  { %843 = vmatpush3.msra.mxu0 %v690_v50 }
 0x161   :  { %844 = vmatprep.subr.mxu0 %v705_v51 }
 0x162   :  { %845 = vmatpush3.msra.mxu0 %v689_v52 }
 0x163   :  { %846 = vmatprep.subr.mxu0 %v704_v53 }
 0x164   :  { %847 = vmatpush3.msra.mxu0 %v688_v54 }
 0x165   :  { %848 = vmatprep.subr.mxu0 %v703_v55 }
 0x166   :  { %849 = vmatpush3.msra.mxu0 %v687_v56 }
 0x167   :  { %850 = vmatprep.subr.mxu0 %v702_v57 }
 0x168   :  { %851 = vmatpush3.msra.mxu0 %v686_v58 }
 0x169   :  { %852 = vmatprep.subr.mxu0 %v701_v59 }
 0x16a   :  { %853 = vmatpush3.msra.mxu0 %v685_v60 }
 0x20b   :  { %v603_v0 = vpop.f32.mrf.mxu0  ;;  %v674_v1 = vpop.f32.mrf.mxu1 }
 0x20c   :  { %v604_v2 = vadd.f32 %v603_v0, %v530_v62 }
 0x20d   :  { %v605_v3 = vpop.f32.mrf.mxu0  ;;  %v676_v9 = vpop.f32.mrf.mxu1 }
 0x20e   :  { %v675_v6 = vadd.f32 %v674_v1, %v604_v2  ;;  %v606_v7 = vadd.f32 %v605_v3, %v534_v63 }
 0x210   :  { %v677_v10 = vadd.f32 %v676_v9, %v606_v7  ;;  %v681_v11 = vmul.f32 0.2, %v675_v6  ;;  %vm679_vm4 = vcmp.gt.f32.partialorder %v675_v6, 0.0 }
 0x212   :  { %v682_v12 = vmul.f32 0.2, %v677_v10  ;;  %vm680_vm5 = vcmp.gt.f32.partialorder %v677_v10, 0.0  ;;  %v683_v14 = vsel %vm679_vm4, %v675_v6, %v681_v11 }
 0x214   :  { %v684_v13 = vsel %vm680_vm5, %v677_v10, %v682_v12 }
 0x215   :  { %788 = vmatprep.mubr.f32.mxu0 %v684_v13 }
 0x216   :  { %789 = vmatmul.mubr.f32.vlgmr.msra.gmra.mxu0 %v683_v14 }
 0x2d6   :  { %v854_v5 = vpop.f32.mrf.mxu0 }
 0x2d8   :  { %v855_v8 = vpop.f32.mrf.mxu0 }
 0x2d9   :  { %v856_v15 = vadd.f32 %v855_v8, %v854_v5 }
 0x2db   :  { %v791_v16 = vadd.f32 %v856_v15, %v821_v4 }
 0x2dd   :  { %v794_v17 = vand.u32 2147483647, %v791_v16  ;;  %vm800_vm6 = vcmp.ge.f32.partialorder %v791_v16, 0.0 }
 0x2df   :  { %v795_v18 = vsub.f32 0.0, %v794_v17 }
 0x2e1   :  { %v796_v19 = vmul.f32 1.442695, %v795_v18 }
 0x2e3   :  { %869 = vpow2.f32 %v796_v19 }
 0x2f0   :  { %v870_v20 = vpop.eup %869 }
 0x2f1   :  { %v798_v21 = vadd.f32 1.0, %v870_v20 }
 0x2f3   :  { %871 = vrcp.f32 %v798_v21 }
 0x300   :  { %v872_v22 = vpop.eup %871 }
 0x301   :  { %v801_v23 = vmul.f32 %v872_v22, %v870_v20 }
 0x303   :  { %v802_v24 = vsel %vm800_vm6, %v872_v22, %v801_v23 }
 0x304   :  { %803 = vst [vmem:[#allocation11] sm:$0xff] %v802_v24 }
 0x305   :  { %984 = shalt.err (!%p981_p1)
}
 0x306   :  { %813 = dma.vmem_to_hbm [thread:$0]  %s811_s8, 128, %s1098_s7, [#allocation4]  }
 0x307   :  { %999 = dma.done.wait [#allocation4], 128  }
 0x308   :  { %1000 = vsyncadd [#allocation4], 4294967168 }
 0x309   :  { %817 = vsyncpa [#allocation3], 1 }
 0x30a   :  { %818 = vsyncpa [#allocation6], 1 }
 0x30b   :  { %819 = vsyncpa [#allocation9], 1 }
 0x30c   :  { %820 = vsyncpa [#allocation4], 1 }

</bundles_post_ra>
